<compile_context>
chip_gen: v6e
topology: v6e:2x2x1
jax: 0.10.0
libtpu: 0.0.40
codegen_flags: <defaults>
</compile_context>

<pallas_src>
import functools

import jax
import jax.numpy as jnp
from jax.experimental import pallas as pl
from jax.experimental.pallas import tpu as pltpu


def encoder_kernel(x_ref, w1_ref, b1_ref, w2_ref, b2_ref, mu_ref, lv_ref,
                   *, compute_dtype):
    # fc1: cast MXU inputs in-kernel (cast hides under DMA/MXU); f32 accumulate,
    # bias + ReLU epilogue in f32 on the VPU.
    x = x_ref[...].astype(compute_dtype)
    w1 = w1_ref[...].astype(compute_dtype)
    h = jnp.dot(x, w1, preferred_element_type=jnp.float32)
    h = jnp.maximum(h + b1_ref[...], 0.0)

    # Fused fc_mu | fc_var: single matmul against the pre-fused (H, 2L) weight.
    # Kept in f32 (not MXU-bound at these shapes -> accuracy for free).
    y = jnp.dot(h, w2_ref[...], preferred_element_type=jnp.float32) + b2_ref[...]

    L = mu_ref.shape[-1]          # L = 128 -> slices land on lane-tile boundaries
    mu_ref[...] = y[:, :L].astype(mu_ref.dtype)
    lv_ref[...] = y[:, L:].astype(lv_ref.dtype)


def _round_up(x, m):
    return ((x + m - 1) // m) * m


def _pick_batch_tile(B, block_b, min_steps=2):
    """Largest multiple-of-8 batch tile <= block_b, capped so the grid keeps at
    least `min_steps` steps when B allows (keeps both v7x TCs busy)."""
    block_b = max(8, (block_b // 8) * 8)
    tb = min(block_b, _round_up(B, 8))                       # never exceed batch
    cap = max(8, _round_up(pl.cdiv(B, min_steps), 8))        # >= min_steps steps
    return max(8, min(tb, cap))


def fuse_latent_params(w_mu, b_mu, w_var, b_var):
    """Fuse fc_mu / fc_var once at init/load time: [W_mu | W_var], [b_mu | b_var]."""
    w2 = jnp.concatenate([w_mu, w_var], axis=1)   # (H, 2L)
    b2 = jnp.concatenate([b_mu, b_var], axis=1)   # (1, 2L)
    return w2, b2


def encoder_forward(x, w1, b1, w2, b2,
                    *, compute_dtype=jnp.bfloat16, block_b=512, out_dtype=None):
    """x: (B, D_in); w1: (D_in, H); b1: (1, H); w2: (H, 2L); b2: (1, 2L)."""
    B, D_in = x.shape
    H = w1.shape[1]
    L = w2.shape[1] // 2
    out_dtype = x.dtype if out_dtype is None else out_dtype

    tb = _pick_batch_tile(B, block_b)
    grid = (pl.cdiv(B, tb),)   # no explicit padding; tail rows masked on store

    # NOTE: at D_in=512/H=256 the resident weights are tiny; if the model grows,
    # consider pipeline_mode=pl.Buffered(1) on the constant-index weight specs.
    mu, log_var = pl.pallas_call(
        functools.partial(encoder_kernel, compute_dtype=compute_dtype),
        out_shape=(
            jax.ShapeDtypeStruct((B, L), out_dtype),   # mu
            jax.ShapeDtypeStruct((B, L), out_dtype),   # log_var
        ),
        grid_spec=pltpu.PrefetchScalarGridSpec(
            num_scalar_prefetch=0,
            grid=grid,
            in_specs=[
                pl.BlockSpec((tb, D_in), lambda i: (i, 0)),   # x: streamed per batch tile
                pl.BlockSpec((D_in, H), lambda i: (0, 0)),    # W1: VMEM-resident
                pl.BlockSpec((1, H), lambda i: (0, 0)),       # b1
                pl.BlockSpec((H, 2 * L), lambda i: (0, 0)),   # [W_mu | W_var]
                pl.BlockSpec((1, 2 * L), lambda i: (0, 0)),   # [b_mu | b_var]
            ],
            out_specs=[
                pl.BlockSpec((tb, L), lambda i: (i, 0)),      # mu (lane-dense, L=128)
                pl.BlockSpec((tb, L), lambda i: (i, 0)),      # log_var
            ],
        ),
        compiler_params=pltpu.CompilerParams(
            dimension_semantics=("parallel",),     # shards batch tiles across TCs on v7x
            vmem_limit_bytes=32 * 1024 * 1024,     # explicit; safe on v7x's 64 MiB VMEM
        ),
    )(x, w1, b1, w2, b2)

    return mu, log_var


def init_params(key, input_dim, hidden_dim, latent_dim, dtype=jnp.float32):
    k1, k2, k3, k4, k5, k6 = jax.random.split(key, 6)

    # Deterministic synthetic init (uniform, PyTorch-Linear-like scale).
    def lin(kw, kb, fan_in, fan_out):
        bound = 1.0 / jnp.sqrt(fan_in)
        w = jax.random.uniform(kw, (fan_in, fan_out), dtype, -bound, bound)
        b = jax.random.uniform(kb, (1, fan_out), dtype, -bound, bound)
        return w, b

    w1, b1 = lin(k1, k2, input_dim, hidden_dim)
    w_mu, b_mu = lin(k3, k4, hidden_dim, latent_dim)
    w_var, b_var = lin(k5, k6, hidden_dim, latent_dim)
    return w1, b1, w_mu, b_mu, w_var, b_var


if __name__ == "__main__":
    # Module defaults (512 / 256 / 128); B=200 exercises an uneven tail tile.
    B, INPUT_DIM, HIDDEN_DIM, LATENT_DIM = 200, 512, 256, 128

    key = jax.random.PRNGKey(0)
    kx, kp = jax.random.split(key)
    x = jax.random.normal(kx, (B, INPUT_DIM), jnp.float32)
    w1, b1, w_mu, b_mu, w_var, b_var = init_params(kp, INPUT_DIM, HIDDEN_DIM, LATENT_DIM)

    # Fuse the latent projections ONCE (init/load time), per perf review.
    w2, b2 = fuse_latent_params(w_mu, b_mu, w_var, b_var)

    # Plain-JAX reference at full f32 precision.
    hp = jax.lax.Precision.HIGHEST
    h_ref = jnp.maximum(jnp.dot(x, w1, precision=hp) + b1, 0.0)
    mu_ref = jnp.dot(h_ref, w_mu, precision=hp) + b_mu
    lv_ref = jnp.dot(h_ref, w_var, precision=hp) + b_var

    # Default perf configuration: bf16 first-stage MXU inputs (cast in-kernel).
    fwd_bf16 = jax.jit(lambda xx, *p: encoder_forward(xx, *p, compute_dtype=jnp.bfloat16))
    mu, log_var = fwd_bf16(x, w1, b1, w2, b2)
    jax.block_until_ready((mu, log_var))
    assert mu.shape == (B, LATENT_DIM) and log_var.shape == (B, LATENT_DIM)
    assert jnp.allclose(mu, mu_ref, atol=5e-2, rtol=5e-2)
    assert jnp.allclose(log_var, lv_ref, atol=5e-2, rtol=5e-2)

    # f32 path sanity check (same kernel, no in-kernel cast).
    fwd_f32 = jax.jit(lambda xx, *p: encoder_forward(xx, *p, compute_dtype=jnp.float32))
    mu32, lv32 = fwd_f32(x, w1, b1, w2, b2)
    jax.block_until_ready((mu32, lv32))
    assert jnp.allclose(mu32, mu_ref, atol=1e-3, rtol=1e-3)
    assert jnp.allclose(lv32, lv_ref, atol=1e-3, rtol=1e-3)

    print("KERNEL_OK")
</pallas_src>

<mosaic_0001>
module attributes {stable_mosaic.version = 11 : i64} {
  func.func @encoder_kernel(%arg0: i32, %arg1: memref<104x512xf32, #tpu.memory_space<vmem>>, %arg2: memref<512x256xf32, #tpu.memory_space<vmem>>, %arg3: memref<1x256xf32, #tpu.memory_space<vmem>>, %arg4: memref<256x256xf32, #tpu.memory_space<vmem>>, %arg5: memref<1x256xf32, #tpu.memory_space<vmem>>, %arg6: memref<104x128xf32, #tpu.memory_space<vmem>>, %arg7: memref<104x128xf32, #tpu.memory_space<vmem>>) attributes {dimension_semantics = [#tpu.dimension_semantics<parallel>], iteration_bounds = array<i64: 2>, scalar_prefetch = 0 : i64, scratch_operands = 0 : i64, tpu.core_type = #tpu.core_type<tc>, window_params = [{transform_indices = @transform_0, window_bounds = array<i64: 104, 512>}, {pipeline_mode = #tpu.pipeline_mode<synchronous>, transform_indices = @transform_1, window_bounds = array<i64: 512, 256>}, {pipeline_mode = #tpu.pipeline_mode<synchronous>, transform_indices = @transform_2, window_bounds = array<i64: 1, 256>}, {pipeline_mode = #tpu.pipeline_mode<synchronous>, transform_indices = @transform_3, window_bounds = array<i64: 256, 256>}, {pipeline_mode = #tpu.pipeline_mode<synchronous>, transform_indices = @transform_4, window_bounds = array<i64: 1, 256>}, {transform_indices = @transform_5, window_bounds = array<i64: 104, 128>}, {transform_indices = @transform_6, window_bounds = array<i64: 104, 128>}]} {
    %c0 = arith.constant 0 : index
    %c0_0 = arith.constant 0 : index
    %0 = vector.load %arg1[%c0, %c0_0] : memref<104x512xf32, #tpu.memory_space<vmem>>, vector<104x512xf32>
    %1 = arith.truncf %0 : vector<104x512xf32> to vector<104x512xbf16>
    %c0_1 = arith.constant 0 : index
    %c0_2 = arith.constant 0 : index
    %2 = vector.load %arg2[%c0_1, %c0_2] : memref<512x256xf32, #tpu.memory_space<vmem>>, vector<512x256xf32>
    %3 = arith.truncf %2 : vector<512x256xf32> to vector<512x256xbf16>
    %cst = arith.constant dense<0.000000e+00> : vector<104x256xf32>
    %4 = tpu.matmul %1, %3, %cst {dimension_numbers = #tpu.dot_dimension_numbers<[1], [0], [0], [1], [0, 0, 1, 1], [], []>} : vector<104x512xbf16>, vector<512x256xbf16>, vector<104x256xf32> -> vector<104x256xf32>
    %c0_3 = arith.constant 0 : index
    %c0_4 = arith.constant 0 : index
    %5 = vector.load %arg3[%c0_3, %c0_4] : memref<1x256xf32, #tpu.memory_space<vmem>>, vector<1x256xf32>
    %6 = vector.broadcast %5 : vector<1x256xf32> to vector<104x256xf32>
    %7 = arith.addf %4, %6 : vector<104x256xf32>
    %cst_5 = arith.constant 0.000000e+00 : f32
    %8 = vector.broadcast %cst_5 : f32 to vector<104x256xf32>
    %9 = arith.maximumf %7, %8 : vector<104x256xf32>
    %c0_6 = arith.constant 0 : index
    %c0_7 = arith.constant 0 : index
    %10 = vector.load %arg4[%c0_6, %c0_7] : memref<256x256xf32, #tpu.memory_space<vmem>>, vector<256x256xf32>
    %cst_8 = arith.constant dense<0.000000e+00> : vector<104x256xf32>
    %11 = tpu.matmul %9, %10, %cst_8 {dimension_numbers = #tpu.dot_dimension_numbers<[1], [0], [0], [1], [0, 0, 1, 1], [], []>} : vector<104x256xf32>, vector<256x256xf32>, vector<104x256xf32> -> vector<104x256xf32>
    %c0_9 = arith.constant 0 : index
    %c0_10 = arith.constant 0 : index
    %12 = vector.load %arg5[%c0_9, %c0_10] : memref<1x256xf32, #tpu.memory_space<vmem>>, vector<1x256xf32>
    %13 = vector.broadcast %12 : vector<1x256xf32> to vector<104x256xf32>
    %14 = arith.addf %11, %13 : vector<104x256xf32>
    %15 = vector.extract_strided_slice %14 {offsets = [0, 0], sizes = [104, 128], strides = [1, 1]} : vector<104x256xf32> to vector<104x128xf32>
    %c0_11 = arith.constant 0 : index
    %c0_12 = arith.constant 0 : index
    %16 = vector.load %arg6[%c0_11, %c0_12] : memref<104x128xf32, #tpu.memory_space<vmem>>, vector<104x128xf32>
    tpu.vector_store %arg6[%c0_11, %c0_12], %15 {strides = array<i32>} : memref<104x128xf32, #tpu.memory_space<vmem>>, vector<104x128xf32>,
    %17 = vector.extract_strided_slice %14 {offsets = [0, 128], sizes = [104, 128], strides = [1, 1]} : vector<104x256xf32> to vector<104x128xf32>
    %c0_13 = arith.constant 0 : index
    %c0_14 = arith.constant 0 : index
    %18 = vector.load %arg7[%c0_13, %c0_14] : memref<104x128xf32, #tpu.memory_space<vmem>>, vector<104x128xf32>
    tpu.vector_store %arg7[%c0_13, %c0_14], %17 {strides = array<i32>} : memref<104x128xf32, #tpu.memory_space<vmem>>, vector<104x128xf32>,
    return
  }
  func.func @transform_0(%arg0: i32) -> (i32, i32) {
    %c0_i32 = arith.constant 0 : i32
    %c0_i32_0 = arith.constant 0 : i32
    return %arg0, %c0_i32 : i32, i32
  }
  func.func @transform_1(%arg0: i32) -> (i32, i32) {
    %c0_i32 = arith.constant 0 : i32
    %c0_i32_0 = arith.constant 0 : i32
    %c0_i32_1 = arith.constant 0 : i32
    return %c0_i32, %c0_i32_0 : i32, i32
  }
  func.func @transform_2(%arg0: i32) -> (i32, i32) {
    %c0_i32 = arith.constant 0 : i32
    %c0_i32_0 = arith.constant 0 : i32
    %c0_i32_1 = arith.constant 0 : i32
    return %c0_i32, %c0_i32_0 : i32, i32
  }
  func.func @transform_3(%arg0: i32) -> (i32, i32) {
    %c0_i32 = arith.constant 0 : i32
    %c0_i32_0 = arith.constant 0 : i32
    %c0_i32_1 = arith.constant 0 : i32
    return %c0_i32, %c0_i32_0 : i32, i32
  }
  func.func @transform_4(%arg0: i32) -> (i32, i32) {
    %c0_i32 = arith.constant 0 : i32
    %c0_i32_0 = arith.constant 0 : i32
    %c0_i32_1 = arith.constant 0 : i32
    return %c0_i32, %c0_i32_0 : i32, i32
  }
  func.func @transform_5(%arg0: i32) -> (i32, i32) {
    %c0_i32 = arith.constant 0 : i32
    %c0_i32_0 = arith.constant 0 : i32
    return %arg0, %c0_i32 : i32, i32
  }
  func.func @transform_6(%arg0: i32) -> (i32, i32) {
    %c0_i32 = arith.constant 0 : i32
    %c0_i32_0 = arith.constant 0 : i32
    return %arg0, %c0_i32 : i32, i32
  }
}

</mosaic_0001>

<bundles_post_ra>
// kernel: _lambda_.1
= control target key start
LH: loop header
LB: loop body
LE: loop exit
PB: predicated region body
PF: predicated region fallthrough
CT: control target
= control target key end

     0   :  { %12 = vsyncpa [#allocation3], 0  ;;  %s2080_s0 = inlined_call_operand.hbm [shape: f32[200,512], index: 0, kind: input, shape index: {}]   ;;  %s2081_s1 = inlined_call_operand.hbm [shape: f32[512,256], index: 1, kind: input, shape index: {}]   ;;  %s2082_s2 = inlined_call_operand.vmem [shape: f32[1,256], index: 2, kind: input, shape index: {}]   ;;  %s2083_s3 = inlined_call_operand.hbm [shape: f32[256,256], index: 3, kind: input, shape index: {}]   ;;  %s2084_s4 = inlined_call_operand.vmem [shape: f32[1,256], index: 4, kind: input, shape index: {}]   ;;  %s2085_s5 = inlined_call_operand.hbm [shape: f32[200,128], index: 5, kind: output, shape index: {0}]   ;;  %s2086_s6 = inlined_call_operand.hbm [shape: f32[200,128], index: 6, kind: output, shape index: {1}]  }
   0x1   :  { %14 = vsyncpa [#allocation3 + $0x1], 0 }
   0x2   :  { %15 = vsyncpa [#allocation6], 0 }
   0x3   :  { %16 = vsyncpa [#allocation4], 0 }
   0x4   :  { %18 = vsyncpa [#allocation4 + $0x1], 0 }
   0x5   :  { %19 = vsyncpa [#allocation10], 0 }
   0x6   :  { %21 = vsyncpa [#allocation10 + $0x1], 0  ;;  %s1660_s21 = smov 0   ;;  %s1662_s22 = smov 0  }
   0x7   :  { %s1664_s23 = smov 0   ;;  %s1666_s24 = smov 0  }
   0x8 LB: > { %s1681_s25 = sadd.s32 4294967295, %s1610_s24   ;;  %s1262_s26 = sadd.s32 4294967294, %s1610_s24   ;;  %s1610_s24 = sphi %s1666_s24, %s2104_s24   ;;  %s1606_s23 = sphi %s1664_s23, %s2103_s23   ;;  %s1602_s22 = sphi %s1662_s22, %s2102_s22   ;;  %s1598_s21 = sphi %s1660_s21, %s2101_s21  }
   0x9   : > { %s1685_s27 = sadd.s32 1, %s1610_s24   ;;  %s34_s28 = sadd.s32 1, %s1606_s23 }
   0xa   : > { %s31_s29 = ssub.s32 %s1610_s24, %s1685_s27  ;;  %p41_p0 = scmp.ne.s32.totalorder %s1606_s23, %s1602_s22 }
   0xb   : > { %p32_p1 = scmp.eq.s32.totalorder %s31_s29, 0  ;;  %p42_p2 = scmp.eq.s32.totalorder %s1610_s24, 0 }
   0xc   : > { %p47_p3 = scmp.ne.s32.totalorder %s1602_s22, %s1598_s21  ;;  %p2087_p4 = scmp.eq.s32.totalorder %s1681_s25, 0 }
   0xd   : > { %s1697_s30 = scalar_select %p32_p1, %s1606_s23, %s34_s28  }
   0xe   : > { %p1699_p5 = por %p42_p2, %p41_p0  ;;  %p1705_p6 = por %p2087_p4, %p47_p3 }
   0xf   : > { %p155_p7 = scmp.eq.s32.totalorder %s1681_s25, 1  ;;  %p161_p8 = scmp.eq.s32.totalorder %s1262_s26, 1 }
  0x10   : > { %s2090_s8 = scalar_select %p1705_p6, 1, 0 }
  0x11   : > { %p1263_p9 = scmp.ge.s32.totalorder %s1610_s24, 1  ;;  %p194_p10 = scmp.lt.s32.totalorder %s1610_s24, 3 }
  0x12   : > { %p1712_p11 = por %p155_p7, %p41_p0  ;;  %p1716_p12 = por %p161_p8, %p47_p3 }
  0x13   : > { %p1720_p13 = pnand %p1263_p9, %p194_p10  ;;  %s1612_s12 = smov [#allocation5]  }
  0x14   : > { %s2091_s9 = scalar_select %p1712_p11, 1, 0 }
  0x15   : > { %s2092_s10 = scalar_select %p1716_p12, 1, 0 }
  0x16   : > { %p1373_p1 = pneg %p1720_p13  ;;  %s206_s13 = sshll.u32 %s1612_s12, 4  ;;  %s207_s13 = int_to_ptr.vmem [resolvable:$true] %s206_s13 }
  0x17   : > { %s1613_s15 = smov [#allocation7]   ;;  %s1445_s17 = scalar_lea.vmem %s207_s13, 16384 }
  0x18   : > { %p1728_p2 = pnand %p1373_p1, %p2087_p4  ;;  %s222_s16 = sshll.u32 %s1613_s15, 4  ;;  %s223_s16 = int_to_ptr.vmem [resolvable:$true] %s222_s16 }
  0x19   : > { %p1446_p3 = scmp.ne.s32.totalorder %s207_s13, %s1445_s17  ;;  %p1453_p9 = scmp.lt.s32.totalorder %s207_s13, %s207_s13 }
  0x1a   : > { %p1436_p0 = pneg %p1728_p2  ;;  %p1454_p10 = scmp.lt.s32.totalorder %s1445_s17, %s1445_s17 }
  0x1c   : > { %p1448_p7 = pnand %p1446_p3, %p1436_p0  ;;  %p1455_p12 = por %p1454_p10, %p1453_p9 }
  0x1e   : > { %p1449_p8 = pneg %p1448_p7 }
  0x20   : > { %p1456_p1 = pnand %p1455_p12, %p1449_p8 }
  0x22   : > { %1459 = shalt.err (!%p1456_p1)
}
  0x23   : > { %s1614_s18 = smov 256   ;;  %s1615_s19 = smov 16  }
  0x24   : > { %1376 = dma.hbm_to_vmem [thread:$0]  (!%p1728_p2), %s2081_s1, 16384, %s207_s13, [#allocation6], %s1614_s18, %s1614_s18, %s1615_s19  }
  0x25   : > { %s1471_s28 = scalar_lea.vmem %s223_s16, 8192  ;;  %p1479_p11 = scmp.lt.s32.totalorder %s223_s16, %s223_s16 }
  0x26   : > { %p1472_p4 = scmp.ne.s32.totalorder %s223_s16, %s1471_s28  ;;  %p1480_p6 = scmp.lt.s32.totalorder %s1471_s28, %s1471_s28 }
  0x28   : > { %p1474_p3 = pnand %p1472_p4, %p1436_p0  ;;  %p1481_p9 = por %p1480_p6, %p1479_p11 }
  0x2a   : > { %p1475_p7 = pneg %p1474_p3 }
  0x2c   : > { %p1482_p12 = pnand %p1481_p9, %p1475_p7 }
  0x2e   : > { %1485 = shalt.err (!%p1482_p12)
}
  0x2f   : > { %1379 = dma.hbm_to_vmem [thread:$0]  (!%p1728_p2), %s2083_s3, 8192, %s223_s16, [#allocation6], %s1614_s18, %s1614_s18, %s1615_s19  }
  0x30   : > { %p1266_p8 = scmp.ge.s32.totalorder %s1610_s24, 2 }
  0x32   : > { %235 = sbr.rel (%p1266_p8) target bundleno = 89 (0x59), region = 32 }
  0x37   : > { %238 = sbr.rel (!%p1699_p5) target bundleno = 89 (0x59), region = 36  ;;  %s239_s13 = sand.u32 (%p1699_p5), 1, %s1606_s23  }
  0x38   : > { %s244_s15 = smul.u32 (%p1699_p5), 13, %s1610_s24  ;;  %s1760_s18 = scalar_lea.sflag (%p1699_p5), [#allocation3], %s239_s13 }
  0x39   : > { %s1359_s17 = smul.u32 (%p1699_p5), 416, %s239_s13 }
  0x3a   : > { %s245_s20 = ssub.s32 (%p1699_p5), 25, %s244_s15 }
  0x3b   : > { %p246_p4 = scmp.lt.s32.totalorder (%p1699_p5), %s245_s20, 13  ;;  %s243_s19 = scalar_lea.vmem (%p1699_p5), [#allocation2], %s1359_s17 }
  0x3d   : > { %s2106_s20 = smov (!%p246_p4, %s245_s20), 13 }
  0x3e   : > { %s1757_s14 = sshll.u32 %s2106_s20, 9 }
  0x3f   : > { %s251_s16 = ssub.s32 6656, %s1757_s14 }
  0x40   : > { %252 = vsyncadd %s1760_s18, %s251_s16  ;;  %p1269_p5 = scmp.ne.s32.totalorder %s1757_s14, 0  ;;  %s1294_s7 = smul.u32 6656, %s1610_s24 }
  0x41   : > { %s258_s26 = sshll.u32 %s243_s19, 4  ;;  %s1490_s20 = scalar_lea.hbm %s2080_s0, 12800  ;;  %s1770_s26 = int_to_ptr.vmem [resolvable:$true] %s258_s26 }
  0x42   : > { %s1768_s12 = scalar_lea.hbm %s2080_s0, %s1294_s7 }
  0x43   : > { %s1486_s13 = scalar_lea.hbm %s1768_s12, %s1757_s14  ;;  %p1491_p0 = scmp.lt.s32.totalorder %s1768_s12, %s2080_s0 }
  0x44   : > { %p1487_p6 = scmp.ne.s32.totalorder %s1768_s12, %s1486_s13  ;;  %p1492_p10 = scmp.lt.s32.totalorder %s1490_s20, %s1486_s13 }
  0x46   : > { %p1488_p11 = pnand %p1487_p6, %p1269_p5  ;;  %p1493_p1 = por %p1492_p10, %p1491_p0 }
  0x48   : > { %p1489_p2 = pneg %p1488_p11 }
  0x4a   : > { %p1494_p3 = pnand %p1493_p1, %p1489_p2 }
  0x4c   : > { %1497 = shalt.err (!%p1494_p3)
}
  0x4d   : > { %s1498_s7 = scalar_lea.vmem %s1770_s26, %s1757_s14  ;;  %s1616_s28 = smov [#allocation2]  }
  0x4e   : > { %p1499_p7 = scmp.ne.s32.totalorder %s1770_s26, %s1498_s7  ;;  %s1502_s29 = sshll.u32 %s1616_s28, 4  ;;  %s1503_s29 = int_to_ptr.vmem [resolvable:$false] %s1502_s29 }
  0x4f   : > { %s1504_s15 = scalar_lea.vmem %s1503_s29, 13312  ;;  %p1505_p4 = scmp.lt.s32.totalorder %s1770_s26, %s1503_s29 }
  0x50   : > { %p1500_p9 = pnand %p1499_p7, %p1269_p5  ;;  %p1506_p6 = scmp.lt.s32.totalorder %s1504_s15, %s1498_s7 }
  0x52   : > { %p1501_p12 = pneg %p1500_p9  ;;  %p1507_p11 = por %p1506_p6, %p1505_p4 }
  0x54   : > { %p1508_p0 = pnand %p1507_p11, %p1501_p12 }
  0x56   : > { %1511 = shalt.err (!%p1508_p0)
}
  0x57   : > { %s1617_s13 = smov 512   ;;  %s1618_s17 = smov 32  }
  0x58   : > { %264 = dma.hbm_to_vmem [thread:$0]  (%p1269_p5), %s1768_s12, %s1757_s14, %s1770_s26, %s1760_s18, %s1617_s13, %s1617_s13, %s1618_s17  }
  0x59 PF: > { %270 = sbr.rel (%p1720_p13) target bundleno = 675 (0x2a3), region = 40  ;;  %s1799_s20 = sand.u32 (!%p1720_p13), 1, %s1602_s22  }
  0x5a   : > { %s1360_s16 = smul.u32 (!%p1720_p13), 416, %s1799_s20  ;;  %s273_s19 = scalar_lea.sflag (!%p1720_p13), [#allocation3], %s1799_s20 }
  0x5b   : > { %p2095_p2 = scmp.ne.s32.totalorder (!%p1720_p13), %s2090_s8, 0 }
  0x5c   : > { %s1803_s7 = scalar_lea.vmem (!%p1720_p13), [#allocation2], %s1360_s16 }
  0x5e   : > { %1581 = dma.done.wait (%p2095_p2), %s273_s19, 6656  }
  0x5f   : > { %1583 = vsyncadd (%p2095_p2), %s273_s19, 4294960640  ;;  %p2096_p5 = scmp.eq.s32.totalorder %s1681_s25, 0 }
  0x61   : > { %1585 = dma.done.wait (%p2096_p5), [#allocation6], 24576   ;;  %p2097_p13 = pmov %p2096_p5 }
  0x62   : > { %v443_v0 = vld [vmem:[#allocation5 + $0xe8] sm:$0xff]  ;;  %v445_v1 = vld [vmem:[#allocation5 + $0xf8] sm:$0xff]  ;;  %v442_v5 = vld [vmem:[#allocation5 + $0xe0] sm:$0xff]  ;;  %s1361_s26 = smul.u32 104, %s1799_s20  ;;  %s1092_s29 = scalar_lea.sflag [#allocation4], %s1799_s20 }
  0x63   : > { %1587 = vsyncadd (%p2097_p13), [#allocation6], 4294942720  ;;  %v507_v2 = vld [vmem:[#allocation5 + $0x2e8] sm:$0xff]  ;;  %v557_v3 = vpack.c.bf16 %v445_v1, %v443_v0  ;;  %v509_v4 = vld [vmem:[#allocation5 + $0x2f8] sm:$0xff]  ;;  %s1097_s15 = scalar_lea.sflag [#allocation10], %s1799_s20  ;;  %p2098_p10 = scmp.ne.s32.totalorder %s2091_s9, 0 }
  0x64   : > { %v444_v6 = vld [vmem:[#allocation5 + $0xf0] sm:$0xff]  ;;  %v589_v7 = vpack.c.bf16 %v509_v4, %v507_v2  ;;  %v506_v9 = vld [vmem:[#allocation5 + $0x2e0] sm:$0xff]  ;;  %v439_v11 = vld [vmem:[#allocation5 + $0xc8] sm:$0xff]  ;;  %s1919_s12 = scalar_lea.vmem [#allocation8], %s1361_s26  ;;  %s1923_s28 = scalar_lea.vmem [#allocation9], %s1361_s26 }
  0x65   : > { %v556_v8 = vpack.c.bf16 %v444_v6, %v442_v5  ;;  %v508_v10 = vld [vmem:[#allocation5 + $0x2f0] sm:$0xff]  ;;  %618 = vmatprep.subr.bf16.mxu0 %v557_v3  ;;  %v441_v13 = vld [vmem:[#allocation5 + $0xd8] sm:$0xff]  ;;  %v503_v14 = vld [vmem:[#allocation5 + $0x2c8] sm:$0xff]  ;;  %s1104_s13 = smul.u32 (%p2098_p10), 13, %s1681_s25 }
  0x66   : > { %v588_v12 = vpack.c.bf16 %v508_v10, %v506_v9  ;;  %v505_v15 = vld [vmem:[#allocation5 + $0x2d8] sm:$0xff]  ;;  %719 = vmatprep.subr.bf16.mxu1 %v589_v7  ;;  %v555_v16 = vpack.c.bf16 %v441_v13, %v439_v11  ;;  %v438_v18 = vld [vmem:[#allocation5 + $0xc0] sm:$0xff]  ;;  %v440_v19 = vld [vmem:[#allocation5 + $0xd0] sm:$0xff] }
  0x67   : > { %619 = vmatpush1.bf16.msra.mxu0 %v556_v8  ;;  %v587_v17 = vpack.c.bf16 %v505_v15, %v503_v14  ;;  %v502_v20 = vld [vmem:[#allocation5 + $0x2c0] sm:$0xff]  ;;  %v554_v21 = vpack.c.bf16 %v440_v19, %v438_v18  ;;  %v504_v22 = vld [vmem:[#allocation5 + $0x2d0] sm:$0xff]  ;;  %v435_v23 = vld [vmem:[#allocation5 + $0xa8] sm:$0xff]  ;;  %s1105_s17 = ssub.s32 (%p2098_p10), 25, %s1104_s13 }
  0x68   : > { %720 = vmatpush1.bf16.msra.mxu1 %v588_v12  ;;  %v437_v24 = vld [vmem:[#allocation5 + $0xb8] sm:$0xff]  ;;  %620 = vmatprep.subr.bf16.mxu0 %v555_v16  ;;  %v586_v25 = vpack.c.bf16 %v504_v22, %v502_v20  ;;  %v499_v27 = vld [vmem:[#allocation5 + $0x2a8] sm:$0xff]  ;;  %v434_v29 = vld [vmem:[#allocation5 + $0xa0] sm:$0xff]  ;;  %p1106_p1 = scmp.lt.s32.totalorder (%p2098_p10), %s1105_s17, 13 }
  0x69   : > { %721 = vmatprep.subr.bf16.mxu1 %v587_v17  ;;  %v553_v26 = vpack.c.bf16 %v437_v24, %v435_v23  ;;  %v501_v28 = vld [vmem:[#allocation5 + $0x2b8] sm:$0xff]  ;;  %v436_v31 = vld [vmem:[#allocation5 + $0xb0] sm:$0xff]  ;;  %v498_v32 = vld [vmem:[#allocation5 + $0x2a0] sm:$0xff] }
  0x6a   : > { %v585_v30 = vpack.c.bf16 %v501_v28, %v499_v27  ;;  %v500_v33 = vld [vmem:[#allocation5 + $0x2b0] sm:$0xff]  ;;  %v552_v34 = vpack.c.bf16 %v436_v31, %v434_v29  ;;  %v431_v35 = vld [vmem:[#allocation5 + $0x88] sm:$0xff]  ;;  %v433_v36 = vld [vmem:[#allocation5 + $0x98] sm:$0xff] }
  0x6b   : > { %621 = vmatpush1.bf16.msra.mxu0 %v554_v21  ;;  %v495_v37 = vld [vmem:[#allocation5 + $0x288] sm:$0xff]  ;;  %v584_v38 = vpack.c.bf16 %v500_v33, %v498_v32  ;;  %v551_v39 = vpack.c.bf16 %v433_v36, %v431_v35  ;;  %v497_v40 = vld [vmem:[#allocation5 + $0x298] sm:$0xff]  ;;  %v430_v41 = vld [vmem:[#allocation5 + $0x80] sm:$0xff] }
  0x6c   : > { %722 = vmatpush1.bf16.msra.mxu1 %v586_v25  ;;  %622 = vmatprep.subr.bf16.mxu0 %v553_v26  ;;  %v432_v42 = vld [vmem:[#allocation5 + $0x90] sm:$0xff]  ;;  %v583_v43 = vpack.c.bf16 %v497_v40, %v495_v37  ;;  %v494_v44 = vld [vmem:[#allocation5 + $0x280] sm:$0xff]  ;;  %v427_v46 = vld [vmem:[#allocation5 + $0x68] sm:$0xff] }
  0x6d   : > { %723 = vmatprep.subr.bf16.mxu1 %v585_v30  ;;  %v496_v45 = vld [vmem:[#allocation5 + $0x290] sm:$0xff]  ;;  %v429_v47 = vld [vmem:[#allocation5 + $0x78] sm:$0xff]  ;;  %v491_v48 = vld [vmem:[#allocation5 + $0x268] sm:$0xff]  ;;  %v550_v50 = vpack.c.bf16 %v432_v42, %v430_v41 }
  0x6e   : > { %v493_v49 = vld [vmem:[#allocation5 + $0x278] sm:$0xff]  ;;  %v582_v51 = vpack.c.bf16 %v496_v45, %v494_v44  ;;  %v549_v52 = vpack.c.bf16 %v429_v47, %v427_v46  ;;  %v426_v53 = vld [vmem:[#allocation5 + $0x60] sm:$0xff]  ;;  %v428_v54 = vld [vmem:[#allocation5 + $0x70] sm:$0xff] }
  0x6f   : > { %623 = vmatpush1.bf16.msra.mxu0 %v552_v34  ;;  %v490_v55 = vld [vmem:[#allocation5 + $0x260] sm:$0xff]  ;;  %v581_v56 = vpack.c.bf16 %v493_v49, %v491_v48  ;;  %v492_v57 = vld [vmem:[#allocation5 + $0x270] sm:$0xff]  ;;  %v423_v58 = vld [vmem:[#allocation5 + $0x48] sm:$0xff]  ;;  %v548_v62 = vpack.c.bf16 %v428_v54, %v426_v53 }
  0x70   : > { %724 = vmatpush1.bf16.msra.mxu1 %v584_v38  ;;  %624 = vmatprep.subr.bf16.mxu0 %v551_v39  ;;  %v425_v59 = vld [vmem:[#allocation5 + $0x58] sm:$0xff]  ;;  %v487_v60 = vld [vmem:[#allocation5 + $0x248] sm:$0xff]  ;;  %v580_v63 = vpack.c.bf16 %v492_v57, %v490_v55  ;;  %v422_v1 = vld [vmem:[#allocation5 + $0x40] sm:$0xff] }
  0x71   : > { %725 = vmatprep.subr.bf16.mxu1 %v583_v43  ;;  %v489_v61 = vld [vmem:[#allocation5 + $0x258] sm:$0xff]  ;;  %v547_v0 = vpack.c.bf16 %v425_v59, %v423_v58  ;;  %v424_v2 = vld [vmem:[#allocation5 + $0x50] sm:$0xff]  ;;  %v486_v3 = vld [vmem:[#allocation5 + $0x240] sm:$0xff] }
  0x72   : > { %v579_v4 = vpack.c.bf16 %v489_v61, %v487_v60  ;;  %v488_v5 = vld [vmem:[#allocation5 + $0x250] sm:$0xff]  ;;  %v419_v6 = vld [vmem:[#allocation5 + $0x28] sm:$0xff]  ;;  %v421_v7 = vld [vmem:[#allocation5 + $0x38] sm:$0xff]  ;;  %v546_v10 = vpack.c.bf16 %v424_v2, %v422_v1 }
  0x73   : > { %625 = vmatpush1.bf16.msra.mxu0 %v550_v50  ;;  %v483_v8 = vld [vmem:[#allocation5 + $0x228] sm:$0xff]  ;;  %v485_v9 = vld [vmem:[#allocation5 + $0x238] sm:$0xff]  ;;  %v578_v11 = vpack.c.bf16 %v488_v5, %v486_v3  ;;  %v545_v12 = vpack.c.bf16 %v421_v7, %v419_v6  ;;  %v418_v13 = vld [vmem:[#allocation5 + $0x20] sm:$0xff] }
  0x74   : > { %726 = vmatpush1.bf16.msra.mxu1 %v582_v51  ;;  %626 = vmatprep.subr.bf16.mxu0 %v549_v52  ;;  %v420_v14 = vld [vmem:[#allocation5 + $0x30] sm:$0xff]  ;;  %v482_v15 = vld [vmem:[#allocation5 + $0x220] sm:$0xff]  ;;  %v577_v16 = vpack.c.bf16 %v485_v9, %v483_v8  ;;  %v415_v18 = vld [vmem:[#allocation5 + $0x8] sm:$0xff] }
  0x75   : > { %727 = vmatprep.subr.bf16.mxu1 %v581_v56  ;;  %v484_v17 = vld [vmem:[#allocation5 + $0x230] sm:$0xff]  ;;  %v417_v19 = vld [vmem:[#allocation5 + $0x18] sm:$0xff]  ;;  %v479_v20 = vld [vmem:[#allocation5 + $0x208] sm:$0xff]  ;;  %v544_v22 = vpack.c.bf16 %v420_v14, %v418_v13 }
  0x76   : > { %v481_v21 = vld [vmem:[#allocation5 + $0x218] sm:$0xff]  ;;  %v576_v23 = vpack.c.bf16 %v484_v17, %v482_v15  ;;  %v543_v24 = vpack.c.bf16 %v417_v19, %v415_v18  ;;  %v414_v25 = vld [vmem:[#allocation5] sm:$0xff]  ;;  %v416_v26 = vld [vmem:[#allocation5 + $0x10] sm:$0xff] }
  0x77   : > { %627 = vmatpush1.bf16.msra.mxu0 %v548_v62  ;;  %v478_v27 = vld [vmem:[#allocation5 + $0x200] sm:$0xff]  ;;  %v575_v28 = vpack.c.bf16 %v481_v21, %v479_v20  ;;  %v480_v29 = vld [vmem:[#allocation5 + $0x210] sm:$0xff]  ;;  %v475_v30 = vld [vmem:[#allocation5 + $0x1e8] sm:$0xff]  ;;  %v542_v34 = vpack.c.bf16 %v416_v26, %v414_v25 }
  0x78   : > { %728 = vmatpush1.bf16.msra.mxu1 %v580_v63  ;;  %628 = vmatprep.subr.bf16.mxu0 %v547_v0  ;;  %v477_v31 = vld [vmem:[#allocation5 + $0x1f8] sm:$0xff]  ;;  %v539_v32 = vld [vmem:[#allocation5 + $0x3e8] sm:$0xff]  ;;  %v574_v35 = vpack.c.bf16 %v480_v29, %v478_v27  ;;  %v474_v37 = vld [vmem:[#allocation5 + $0x1e0] sm:$0xff] }
  0x79   : > { %729 = vmatprep.subr.bf16.mxu1 %v579_v4  ;;  %v541_v33 = vld [vmem:[#allocation5 + $0x3f8] sm:$0xff]  ;;  %v573_v36 = vpack.c.bf16 %v477_v31, %v475_v30  ;;  %v476_v38 = vld [vmem:[#allocation5 + $0x1f0] sm:$0xff]  ;;  %v538_v39 = vld [vmem:[#allocation5 + $0x3e0] sm:$0xff] }
  0x7a   : > { %v605_v40 = vpack.c.bf16 %v541_v33, %v539_v32  ;;  %v540_v41 = vld [vmem:[#allocation5 + $0x3f0] sm:$0xff]  ;;  %v471_v42 = vld [vmem:[#allocation5 + $0x1c8] sm:$0xff]  ;;  %v473_v43 = vld [vmem:[#allocation5 + $0x1d8] sm:$0xff]  ;;  %v572_v46 = vpack.c.bf16 %v476_v38, %v474_v37 }
  0x7b   : > { %629 = vmatpush1.bf16.msra.mxu0 %v546_v10  ;;  %v535_v44 = vld [vmem:[#allocation5 + $0x3c8] sm:$0xff]  ;;  %v537_v45 = vld [vmem:[#allocation5 + $0x3d8] sm:$0xff]  ;;  %v604_v47 = vpack.c.bf16 %v540_v41, %v538_v39  ;;  %v571_v48 = vpack.c.bf16 %v473_v43, %v471_v42  ;;  %v470_v49 = vld [vmem:[#allocation5 + $0x1c0] sm:$0xff] }
  0x7c   : > { %730 = vmatpush1.bf16.msra.mxu1 %v578_v11  ;;  %630 = vmatprep.subr.bf16.mxu0 %v545_v12  ;;  %v472_v50 = vld [vmem:[#allocation5 + $0x1d0] sm:$0xff]  ;;  %v534_v51 = vld [vmem:[#allocation5 + $0x3c0] sm:$0xff]  ;;  %v603_v52 = vpack.c.bf16 %v537_v45, %v535_v44  ;;  %v467_v54 = vld [vmem:[#allocation5 + $0x1a8] sm:$0xff] }
  0x7d   : > { %731 = vmatprep.subr.bf16.mxu1 %v577_v16  ;;  %v536_v53 = vld [vmem:[#allocation5 + $0x3d0] sm:$0xff]  ;;  %v469_v55 = vld [vmem:[#allocation5 + $0x1b8] sm:$0xff]  ;;  %v531_v56 = vld [vmem:[#allocation5 + $0x3a8] sm:$0xff]  ;;  %v570_v58 = vpack.c.bf16 %v472_v50, %v470_v49 }
  0x7e   : > { %v533_v57 = vld [vmem:[#allocation5 + $0x3b8] sm:$0xff]  ;;  %v602_v59 = vpack.c.bf16 %v536_v53, %v534_v51  ;;  %v569_v60 = vpack.c.bf16 %v469_v55, %v467_v54  ;;  %v466_v61 = vld [vmem:[#allocation5 + $0x1a0] sm:$0xff]  ;;  %v468_v62 = vld [vmem:[#allocation5 + $0x1b0] sm:$0xff] }
  0x7f   : > { %631 = vmatpush1.bf16.msra.mxu0 %v544_v22  ;;  %v530_v63 = vld [vmem:[#allocation5 + $0x3a0] sm:$0xff]  ;;  %v601_v0 = vpack.c.bf16 %v533_v57, %v531_v56  ;;  %v532_v1 = vld [vmem:[#allocation5 + $0x3b0] sm:$0xff]  ;;  %v463_v2 = vld [vmem:[#allocation5 + $0x188] sm:$0xff]  ;;  %v568_v6 = vpack.c.bf16 %v468_v62, %v466_v61 }
  0x80   : > { %732 = vmatpush1.bf16.msra.mxu1 %v576_v23  ;;  %632 = vmatprep.subr.bf16.mxu0 %v543_v24  ;;  %v465_v3 = vld [vmem:[#allocation5 + $0x198] sm:$0xff]  ;;  %v527_v4 = vld [vmem:[#allocation5 + $0x388] sm:$0xff]  ;;  %v462_v7 = vld [vmem:[#allocation5 + $0x180] sm:$0xff]  ;;  %v600_v10 = vpack.c.bf16 %v532_v1, %v530_v63 }
  0x81   : > { %733 = vmatprep.subr.bf16.mxu1 %v575_v28  ;;  %v529_v5 = vld [vmem:[#allocation5 + $0x398] sm:$0xff]  ;;  %v464_v8 = vld [vmem:[#allocation5 + $0x190] sm:$0xff]  ;;  %v526_v9 = vld [vmem:[#allocation5 + $0x380] sm:$0xff]  ;;  %v567_v11 = vpack.c.bf16 %v465_v3, %v463_v2 }
  0x82   : > { %v528_v12 = vld [vmem:[#allocation5 + $0x390] sm:$0xff]  ;;  %v459_v13 = vld [vmem:[#allocation5 + $0x168] sm:$0xff]  ;;  %v461_v14 = vld [vmem:[#allocation5 + $0x178] sm:$0xff]  ;;  %v599_v15 = vpack.c.bf16 %v529_v5, %v527_v4  ;;  %v566_v22 = vpack.c.bf16 %v464_v8, %v462_v7 }
  0x83   : > { %633 = vmatpush1.bf16.msra.mxu0 %v542_v34  ;;  %v523_v16 = vld [vmem:[#allocation5 + $0x368] sm:$0xff]  ;;  %v525_v17 = vld [vmem:[#allocation5 + $0x378] sm:$0xff]  ;;  %v598_v25 = vpack.c.bf16 %v528_v12, %v526_v9  ;;  %v565_v26 = vpack.c.bf16 %v461_v14, %v459_v13  ;;  %v458_v27 = vld [vmem:[#allocation5 + $0x160] sm:$0xff] }
  0x84   : > { %734 = vmatpush1.bf16.msra.mxu1 %v574_v35  ;;  %634 = vmatprep.subr.bf16.mxu0 %v573_v36  ;;  %v335_v18 = vld [vmem:[%s1803_s7 + $0x8] sm:$0xff]  ;;  %v337_v20 = vld [vmem:[%s1803_s7 + $0x18] sm:$0xff]  ;;  %v460_v28 = vld [vmem:[#allocation5 + $0x170] sm:$0xff]  ;;  %v597_v30 = vpack.c.bf16 %v525_v17, %v523_v16 }
  0x85   : > { %735 = vmatprep.subr.bf16.mxu1 %v605_v40  ;;  %v339_v19 = vld [vmem:[%s1803_s7 + $0x28] sm:$0xff]  ;;  %v341_v21 = vld [vmem:[%s1803_s7 + $0x38] sm:$0xff]  ;;  %v522_v29 = vld [vmem:[#allocation5 + $0x360] sm:$0xff]  ;;  %v564_v36 = vpack.c.bf16 %v460_v28, %v458_v27 }
  0x86   : > { %v387_v23 = vpack.c.bf16 %v339_v19, %v335_v18  ;;  %v389_v24 = vpack.c.bf16 %v341_v21, %v337_v20  ;;  %v524_v31 = vld [vmem:[#allocation5 + $0x370] sm:$0xff]  ;;  %v455_v32 = vld [vmem:[#allocation5 + $0x148] sm:$0xff]  ;;  %v457_v33 = vld [vmem:[#allocation5 + $0x158] sm:$0xff] }
  0x87   : > { %635 = vmatpush2.bf16.msra.mxu0 %v572_v46  ;;  %v519_v34 = vld [vmem:[#allocation5 + $0x348] sm:$0xff]  ;;  %v521_v35 = vld [vmem:[#allocation5 + $0x358] sm:$0xff]  ;;  %v596_v37 = vpack.c.bf16 %v524_v31, %v522_v29  ;;  %v563_v38 = vpack.c.bf16 %v457_v33, %v455_v32  ;;  %v454_v39 = vld [vmem:[#allocation5 + $0x140] sm:$0xff] }
  0x88   : > { %736 = vmatpush2.bf16.msra.mxu1 %v604_v47  ;;  %636 = vmatprep.subr.bf16.mxu0 %v571_v48  ;;  %v456_v40 = vld [vmem:[#allocation5 + $0x150] sm:$0xff]  ;;  %v518_v41 = vld [vmem:[#allocation5 + $0x340] sm:$0xff]  ;;  %v595_v42 = vpack.c.bf16 %v521_v35, %v519_v34  ;;  %v451_v44 = vld [vmem:[#allocation5 + $0x128] sm:$0xff] }
  0x89   : > { %737 = vmatprep.subr.bf16.mxu1 %v603_v52  ;;  %650 = vmatprep.mubr.bf16.mxu0 %v387_v23  ;;  %v520_v43 = vld [vmem:[#allocation5 + $0x350] sm:$0xff]  ;;  %v453_v45 = vld [vmem:[#allocation5 + $0x138] sm:$0xff]  ;;  %v515_v46 = vld [vmem:[#allocation5 + $0x328] sm:$0xff]  ;;  %v562_v48 = vpack.c.bf16 %v456_v40, %v454_v39 }
  0x8a   : > { %751 = vmatprep.mubr.bf16.mxu1 %v389_v24  ;;  %v517_v47 = vld [vmem:[#allocation5 + $0x338] sm:$0xff]  ;;  %v594_v49 = vpack.c.bf16 %v520_v43, %v518_v41  ;;  %v561_v50 = vpack.c.bf16 %v453_v45, %v451_v44  ;;  %v450_v51 = vld [vmem:[#allocation5 + $0x120] sm:$0xff]  ;;  %v452_v52 = vld [vmem:[#allocation5 + $0x130] sm:$0xff] }
  0x8b   : > { %637 = vmatpush2.bf16.msra.mxu0 %v570_v58  ;;  %v514_v53 = vld [vmem:[#allocation5 + $0x320] sm:$0xff]  ;;  %v593_v54 = vpack.c.bf16 %v517_v47, %v515_v46  ;;  %v516_v55 = vld [vmem:[#allocation5 + $0x330] sm:$0xff]  ;;  %v447_v56 = vld [vmem:[#allocation5 + $0x108] sm:$0xff] }
  0x8c   : > { %738 = vmatpush2.bf16.msra.mxu1 %v602_v59  ;;  %638 = vmatprep.subr.bf16.mxu0 %v569_v60  ;;  %v449_v57 = vld [vmem:[#allocation5 + $0x118] sm:$0xff]  ;;  %v511_v58 = vld [vmem:[#allocation5 + $0x308] sm:$0xff]  ;;  %v560_v60 = vpack.c.bf16 %v452_v52, %v450_v51  ;;  %v592_v61 = vpack.c.bf16 %v516_v55, %v514_v53  ;;  %v446_v63 = vld [vmem:[#allocation5 + $0x100] sm:$0xff] }
  0x8d   : > { %739 = vmatprep.subr.bf16.mxu1 %v601_v0  ;;  %v513_v59 = vld [vmem:[#allocation5 + $0x318] sm:$0xff]  ;;  %v559_v62 = vpack.c.bf16 %v449_v57, %v447_v56  ;;  %v448_v0 = vld [vmem:[#allocation5 + $0x110] sm:$0xff]  ;;  %v510_v2 = vld [vmem:[#allocation5 + $0x300] sm:$0xff] }
  0x8e   : > { %v591_v1 = vpack.c.bf16 %v513_v59, %v511_v58  ;;  %v512_v3 = vld [vmem:[#allocation5 + $0x310] sm:$0xff]  ;;  %v558_v4 = vpack.c.bf16 %v448_v0, %v446_v63  ;;  %v334_v5 = vld [vmem:[%s1803_s7] sm:$0xff]  ;;  %v345_v12 = vld [vmem:[%s1803_s7 + $0x58] sm:$0xff] }
  0x8f   : > { %639 = vmatpush2.bf16.msra.mxu0 %v568_v6  ;;  %v338_v6 = vld [vmem:[%s1803_s7 + $0x20] sm:$0xff]  ;;  %v336_v7 = vld [vmem:[%s1803_s7 + $0x10] sm:$0xff]  ;;  %v590_v8 = vpack.c.bf16 %v512_v3, %v510_v2  ;;  %v349_v13 = vld [vmem:[%s1803_s7 + $0x78] sm:$0xff] }
  0x90   : > { %740 = vmatpush2.bf16.msra.mxu1 %v600_v10  ;;  %640 = vmatprep.subr.bf16.mxu0 %v567_v11  ;;  %v340_v9 = vld [vmem:[%s1803_s7 + $0x30] sm:$0xff]  ;;  %v343_v10 = vld [vmem:[%s1803_s7 + $0x48] sm:$0xff]  ;;  %v877_v14 = vld [vmem:[#allocation7 + $0xf8] sm:$0xff]  ;;  %v393_v18 = vpack.c.bf16 %v349_v13, %v345_v12 }
  0x91   : > { %741 = vmatprep.subr.bf16.mxu1 %v599_v15  ;;  %v347_v11 = vld [vmem:[%s1803_s7 + $0x68] sm:$0xff]  ;;  %v386_v15 = vpack.c.bf16 %v338_v6, %v334_v5  ;;  %v388_v16 = vpack.c.bf16 %v340_v9, %v336_v7  ;;  %v876_v19 = vld [vmem:[#allocation7 + $0xf0] sm:$0xff]  ;;  %v342_v20 = vld [vmem:[%s1803_s7 + $0x40] sm:$0xff] }
  0x92   : > { %v391_v17 = vpack.c.bf16 %v347_v11, %v343_v10  ;;  %v346_v21 = vld [vmem:[%s1803_s7 + $0x60] sm:$0xff]  ;;  %v344_v23 = vld [vmem:[%s1803_s7 + $0x50] sm:$0xff]  ;;  %v355_v27 = vld [vmem:[%s1803_s7 + $0xa8] sm:$0xff] }
  0x93   : > { %641 = vmatpush2.bf16.msra.mxu0 %v566_v22  ;;  %v875_v22 = vld [vmem:[#allocation7 + $0xe8] sm:$0xff]  ;;  %v348_v24 = vld [vmem:[%s1803_s7 + $0x70] sm:$0xff]  ;;  %v873_v28 = vld [vmem:[#allocation7 + $0xd8] sm:$0xff]  ;;  %v390_v32 = vpack.c.bf16 %v346_v21, %v342_v20 }
  0x94   : > { %742 = vmatpush2.bf16.msra.mxu1 %v598_v25  ;;  %642 = vmatprep.subr.bf16.mxu0 %v565_v26  ;;  %v874_v25 = vld [vmem:[#allocation7 + $0xe0] sm:$0xff]  ;;  %v351_v26 = vld [vmem:[%s1803_s7 + $0x88] sm:$0xff]  ;;  %v353_v29 = vld [vmem:[%s1803_s7 + $0x98] sm:$0xff]  ;;  %v392_v34 = vpack.c.bf16 %v348_v24, %v344_v23 }
  0x95   : > { %743 = vmatprep.subr.bf16.mxu1 %v597_v30  ;;  %v357_v30 = vld [vmem:[%s1803_s7 + $0xb8] sm:$0xff]  ;;  %v872_v31 = vld [vmem:[#allocation7 + $0xd0] sm:$0xff]  ;;  %v871_v33 = vld [vmem:[#allocation7 + $0xc8] sm:$0xff]  ;;  %v395_v35 = vpack.c.bf16 %v355_v27, %v351_v26 }
  0x96   : > { %v354_v39 = vld [vmem:[%s1803_s7 + $0xa0] sm:$0xff]  ;;  %v869_v40 = vld [vmem:[#allocation7 + $0xb8] sm:$0xff]  ;;  %v352_v41 = vld [vmem:[%s1803_s7 + $0x90] sm:$0xff] }
  0x97   : > { %643 = vmatpush2.bf16.msra.mxu0 %v564_v36  ;;  %v397_v36 = vpack.c.bf16 %v357_v30, %v353_v29  ;;  %v868_v43 = vld [vmem:[#allocation7 + $0xb0] sm:$0xff]  ;;  %v359_v44 = vld [vmem:[%s1803_s7 + $0xc8] sm:$0xff]  ;;  %v361_v47 = vld [vmem:[%s1803_s7 + $0xd8] sm:$0xff] }
  0x98   : > { %744 = vmatpush2.bf16.msra.mxu1 %v596_v37  ;;  %644 = vmatprep.subr.bf16.mxu0 %v563_v38  ;;  %v870_v37 = vld [vmem:[#allocation7 + $0xc0] sm:$0xff]  ;;  %v363_v45 = vld [vmem:[%s1803_s7 + $0xe8] sm:$0xff]  ;;  %v865_v51 = vld [vmem:[#allocation7 + $0x98] sm:$0xff] }
  0x99   : > { %745 = vmatprep.subr.bf16.mxu1 %v595_v42  ;;  %v350_v38 = vld [vmem:[%s1803_s7 + $0x80] sm:$0xff]  ;;  %v356_v42 = vld [vmem:[%s1803_s7 + $0xb0] sm:$0xff]  ;;  %v867_v46 = vld [vmem:[#allocation7 + $0xa8] sm:$0xff]  ;;  %v399_v53 = vpack.c.bf16 %v363_v45, %v359_v44 }
  0x9a   : > { %v396_v52 = vpack.c.bf16 %v356_v42, %v352_v41  ;;  %v864_v55 = vld [vmem:[#allocation7 + $0x90] sm:$0xff]  ;;  %v358_v56 = vld [vmem:[%s1803_s7 + $0xc0] sm:$0xff]  ;;  %v863_v58 = vld [vmem:[#allocation7 + $0x88] sm:$0xff] }
  0x9b   : > { %645 = vmatpush2.bf16.msra.mxu0 %v562_v48  ;;  %v365_v48 = vld [vmem:[%s1803_s7 + $0xf8] sm:$0xff]  ;;  %v362_v57 = vld [vmem:[%s1803_s7 + $0xe0] sm:$0xff]  ;;  %v360_v59 = vld [vmem:[%s1803_s7 + $0xd0] sm:$0xff] }
  0x9c   : > { %746 = vmatpush2.bf16.msra.mxu1 %v594_v49  ;;  %646 = vmatprep.subr.bf16.mxu0 %v561_v50  ;;  %v866_v49 = vld [vmem:[#allocation7 + $0xa0] sm:$0xff]  ;;  %v394_v50 = vpack.c.bf16 %v354_v39, %v350_v38  ;;  %v371_v63 = vld [vmem:[%s1803_s7 + $0x128] sm:$0xff]  ;;  %v861_v0 = vld [vmem:[#allocation7 + $0x78] sm:$0xff] }
  0x9d   : > { %747 = vmatprep.subr.bf16.mxu1 %v593_v54  ;;  %v401_v54 = vpack.c.bf16 %v365_v48, %v361_v47  ;;  %v373_v2 = vld [vmem:[%s1803_s7 + $0x138] sm:$0xff]  ;;  %v860_v3 = vld [vmem:[#allocation7 + $0x70] sm:$0xff]  ;;  %v859_v5 = vld [vmem:[#allocation7 + $0x68] sm:$0xff] }
  0x9e   : > { %v858_v9 = vld [vmem:[#allocation7 + $0x60] sm:$0xff]  ;;  %v857_v12 = vld [vmem:[#allocation7 + $0x58] sm:$0xff]  ;;  %v368_v13 = vld [vmem:[%s1803_s7 + $0x110] sm:$0xff] }
  0x9f   : > { %647 = vmatpush2.bf16.msra.mxu0 %v560_v60  ;;  %v364_v60 = vld [vmem:[%s1803_s7 + $0xf0] sm:$0xff]  ;;  %v366_v10 = vld [vmem:[%s1803_s7 + $0x100] sm:$0xff]  ;;  %v381_v20 = vld [vmem:[%s1803_s7 + $0x178] sm:$0xff] }
  0xa0   : > { %748 = vmatpush2.bf16.msra.mxu1 %v592_v61  ;;  %648 = vmatprep.subr.bf16.mxu0 %v559_v62  ;;  %v862_v61 = vld [vmem:[#allocation7 + $0x80] sm:$0xff]  ;;  %v367_v62 = vld [vmem:[%s1803_s7 + $0x108] sm:$0xff]  ;;  %v400_v6 = vpack.c.bf16 %v364_v60, %v360_v59  ;;  %v853_v23 = vld [vmem:[#allocation7 + $0x38] sm:$0xff] }
  0xa1   : > { %749 = vmatprep.subr.bf16.mxu1 %v591_v1  ;;  %v369_v1 = vld [vmem:[%s1803_s7 + $0x118] sm:$0xff]  ;;  %v403_v7 = vpack.c.bf16 %v371_v63, %v367_v62  ;;  %v370_v11 = vld [vmem:[%s1803_s7 + $0x120] sm:$0xff]  ;;  %v852_v27 = vld [vmem:[#allocation7 + $0x30] sm:$0xff] }
  0xa2   : > { %v854_v21 = vld [vmem:[#allocation7 + $0x40] sm:$0xff]  ;;  %v851_v29 = vld [vmem:[#allocation7 + $0x28] sm:$0xff]  ;;  %v909_v44 = vld [vmem:[#allocation7 + $0x1f8] sm:$0xff] }
  0xa3   : > { %649 = vmatpush2.bf16.msra.mxu0 %v558_v4  ;;  %v398_v4 = vpack.c.bf16 %v362_v57, %v358_v56  ;;  %v378_v30 = vld [vmem:[%s1803_s7 + $0x160] sm:$0xff]  ;;  %v847_v39 = vld [vmem:[#allocation7 + $0x8] sm:$0xff]  ;;  %v384_v47 = vld [vmem:[%s1803_s7 + $0x190] sm:$0xff] }
  0xa4   : > { %750 = vmatpush2.bf16.msra.mxu1 %v590_v8  ;;  %922 = vmatprep.subr.mxu0 %v877_v14  ;;  %v405_v8 = vpack.c.bf16 %v373_v2, %v369_v1  ;;  %v382_v45 = vld [vmem:[%s1803_s7 + $0x180] sm:$0xff]  ;;  %v907_v48 = vld [vmem:[#allocation7 + $0x1e8] sm:$0xff]  ;;  %v901_v56 = vld [vmem:[#allocation7 + $0x1b8] sm:$0xff] }
  0xa5   : > { %1295 = vmatprep.subr.mxu1 %v877_v14  ;;  %v372_v14 = vld [vmem:[%s1803_s7 + $0x130] sm:$0xff]  ;;  %v898_v59 = vld [vmem:[#allocation7 + $0x1a0] sm:$0xff]  ;;  %v897_v60 = vld [vmem:[#allocation7 + $0x198] sm:$0xff] }
  0xa6   : > { %651 = vmatmul.mubr.bf16.vlgmr.msra.gmra.mxu0 %v386_v15  ;;  %v856_v15 = vld [vmem:[#allocation7 + $0x50] sm:$0xff]  ;;  %v404_v24 = vpack.c.bf16 %v372_v14, %v368_v13  ;;  %v895_v62 = vld [vmem:[#allocation7 + $0x188] sm:$0xff]  ;;  %v894_v63 = vld [vmem:[#allocation7 + $0x180] sm:$0xff] }
  0xa7   : > { %752 = vmatmul.mubr.bf16.vlgmr.msra.gmra.mxu1 %v388_v16  ;;  %660 = vmatprep.mubr.bf16.mxu0 %v391_v17  ;;  %v375_v16 = vld [vmem:[%s1803_s7 + $0x148] sm:$0xff]  ;;  %v900_v57 = vld [vmem:[#allocation7 + $0x1b0] sm:$0xff] }
  0xa8   : > { %761 = vmatprep.mubr.bf16.mxu1 %v393_v18  ;;  %923 = vmatpush1.msra.mxu0 %v876_v19  ;;  %v379_v17 = vld [vmem:[%s1803_s7 + $0x168] sm:$0xff]  ;;  %v892_v1 = vld [vmem:[#allocation7 + $0x170] sm:$0xff] }
  0xa9   : > { %924 = vmatprep.subr.mxu0 %v875_v22  ;;  %1327 = vmatpush1.msra.mxu1 %v876_v19  ;;  %v855_v18 = vld [vmem:[#allocation7 + $0x48] sm:$0xff]  ;;  %v377_v19 = vld [vmem:[%s1803_s7 + $0x158] sm:$0xff]  ;;  %v880_v13 = vld [vmem:[#allocation7 + $0x110] sm:$0xff] }
  0xaa   : > { %925 = vmatpush1.msra.mxu0 %v874_v25  ;;  %1296 = vmatprep.subr.mxu1 %v875_v22  ;;  %v402_v22 = vpack.c.bf16 %v370_v11, %v366_v10  ;;  %v409_v26 = vpack.c.bf16 %v381_v20, %v377_v19  ;;  %v891_v2 = vld [vmem:[#allocation7 + $0x168] sm:$0xff]  ;;  %v882_v11 = vld [vmem:[#allocation7 + $0x120] sm:$0xff] }
  0xab   : > { %926 = vmatprep.subr.mxu0 %v873_v28  ;;  %1328 = vmatpush1.msra.mxu1 %v874_v25  ;;  %v407_v25 = vpack.c.bf16 %v379_v17, %v375_v16  ;;  %v883_v10 = vld [vmem:[#allocation7 + $0x128] sm:$0xff]  ;;  %v608_v16 = vlaneseq  ;;  %v606_v19 = vld [vmem:[%s2082_s2] sm:$0x3] }
  0xac   : > { %927 = vmatpush1.msra.mxu0 %v872_v31  ;;  %1297 = vmatprep.subr.mxu1 %v873_v28  ;;  %v374_v28 = vld [vmem:[%s1803_s7 + $0x140] sm:$0xff]  ;;  %v879_v14 = vld [vmem:[#allocation7 + $0x108] sm:$0xff] }
  0xad   : > { %928 = vmatprep.subr.mxu0 %v871_v33  ;;  %1329 = vmatpush1.msra.mxu1 %v872_v31  ;;  %v376_v31 = vld [vmem:[%s1803_s7 + $0x150] sm:$0xff]  ;;  %v406_v38 = vpack.c.bf16 %v378_v30, %v374_v28  ;;  %v1865_v17 = vshrl.u32 %v608_v16, 7 }
  0xae   : > { %661 = vmatmul.mubr.bf16.gmra.mxu0 %v390_v32  ;;  %1298 = vmatprep.subr.mxu1 %v871_v33  ;;  %v850_v32 = vld [vmem:[#allocation7 + $0x20] sm:$0xff]  ;;  %v380_v33 = vld [vmem:[%s1803_s7 + $0x170] sm:$0xff] }
  0xaf   : > { %762 = vmatmul.mubr.bf16.gmra.mxu1 %v392_v34  ;;  %670 = vmatprep.mubr.bf16.mxu0 %v395_v35  ;;  %v383_v34 = vld [vmem:[%s1803_s7 + $0x188] sm:$0xff]  ;;  %v849_v35 = vld [vmem:[#allocation7 + $0x18] sm:$0xff]  ;;  %v614_v20 = vsub.s32 1, %v1865_v17 }
  0xb0   : > { %771 = vmatprep.mubr.bf16.mxu1 %v397_v36  ;;  %929 = vmatpush1.msra.mxu0 %v870_v37  ;;  %v385_v36 = vld [vmem:[%s1803_s7 + $0x198] sm:$0xff]  ;;  %v411_v41 = vpack.c.bf16 %v383_v34, %v383_v34 }
  0xb1   : > { %930 = vmatprep.subr.mxu0 %v869_v40  ;;  %1330 = vmatpush1.msra.mxu1 %v870_v37  ;;  %v848_v37 = vld [vmem:[#allocation7 + $0x10] sm:$0xff]  ;;  %v413_v42 = vpack.c.bf16 %v385_v36, %v385_v36 }
  0xb2   : > { %931 = vmatpush1.msra.mxu0 %v868_v43  ;;  %1299 = vmatprep.subr.mxu1 %v869_v40  ;;  %v408_v40 = vpack.c.bf16 %v380_v33, %v376_v31 }
  0xb3   : > { %932 = vmatprep.subr.mxu0 %v867_v46  ;;  %1331 = vmatpush1.msra.mxu1 %v868_v43  ;;  %v846_v43 = vld [vmem:[#allocation7] sm:$0xff] }
  0xb4   : > { %933 = vmatpush1.msra.mxu0 %v866_v49  ;;  %1300 = vmatprep.subr.mxu1 %v867_v46  ;;  %v908_v46 = vld [vmem:[#allocation7 + $0x1f0] sm:$0xff] }
  0xb5   : > { %934 = vmatprep.subr.mxu0 %v865_v51  ;;  %1332 = vmatpush1.msra.mxu1 %v866_v49  ;;  %v906_v49 = vld [vmem:[#allocation7 + $0x1e0] sm:$0xff] }
  0xb6   : > { %671 = vmatmul.mubr.bf16.gmra.mxu0 %v394_v50  ;;  %1301 = vmatprep.subr.mxu1 %v865_v51  ;;  %v410_v50 = vpack.c.bf16 %v382_v45, %v382_v45  ;;  %v905_v51 = vld [vmem:[#allocation7 + $0x1d8] sm:$0xff] }
  0xb7   : > { %772 = vmatmul.mubr.bf16.gmra.mxu1 %v396_v52  ;;  %680 = vmatprep.mubr.bf16.mxu0 %v399_v53  ;;  %v412_v52 = vpack.c.bf16 %v384_v47, %v384_v47  ;;  %v904_v53 = vld [vmem:[#allocation7 + $0x1d0] sm:$0xff] }
  0xb8   : > { %781 = vmatprep.mubr.bf16.mxu1 %v401_v54  ;;  %935 = vmatpush1.msra.mxu0 %v864_v55  ;;  %v903_v54 = vld [vmem:[#allocation7 + $0x1c8] sm:$0xff] }
  0xb9   : > { %936 = vmatprep.subr.mxu0 %v863_v58  ;;  %1333 = vmatpush1.msra.mxu1 %v864_v55  ;;  %v902_v55 = vld [vmem:[#allocation7 + $0x1c0] sm:$0xff] }
  0xba   : > { %937 = vmatpush1.msra.mxu0 %v862_v61  ;;  %1302 = vmatprep.subr.mxu1 %v863_v58  ;;  %v899_v58 = vld [vmem:[#allocation7 + $0x1a8] sm:$0xff] }
  0xbb   : > { %938 = vmatprep.subr.mxu0 %v861_v0  ;;  %1334 = vmatpush1.msra.mxu1 %v862_v61  ;;  %v896_v61 = vld [vmem:[#allocation7 + $0x190] sm:$0xff] }
  0xbc   : > { %939 = vmatpush1.msra.mxu0 %v860_v3  ;;  %1303 = vmatprep.subr.mxu1 %v861_v0  ;;  %v893_v0 = vld [vmem:[#allocation7 + $0x178] sm:$0xff] }
  0xbd   : > { %940 = vmatprep.subr.mxu0 %v859_v5  ;;  %1335 = vmatpush1.msra.mxu1 %v860_v3  ;;  %v890_v3 = vld [vmem:[#allocation7 + $0x160] sm:$0xff] }
  0xbe   : > { %681 = vmatmul.mubr.bf16.gmra.mxu0 %v398_v4  ;;  %1304 = vmatprep.subr.mxu1 %v859_v5  ;;  %v889_v4 = vld [vmem:[#allocation7 + $0x158] sm:$0xff]  ;;  %v888_v5 = vld [vmem:[#allocation7 + $0x150] sm:$0xff] }
  0xbf   : > { %782 = vmatmul.mubr.bf16.gmra.mxu1 %v400_v6  ;;  %690 = vmatprep.mubr.bf16.mxu0 %v403_v7  ;;  %v887_v6 = vld [vmem:[#allocation7 + $0x148] sm:$0xff]  ;;  %v886_v7 = vld [vmem:[#allocation7 + $0x140] sm:$0xff] }
  0xc0   : > { %791 = vmatprep.mubr.bf16.mxu1 %v405_v8  ;;  %941 = vmatpush1.msra.mxu0 %v858_v9  ;;  %v885_v8 = vld [vmem:[#allocation7 + $0x138] sm:$0xff] }
  0xc1   : > { %942 = vmatprep.subr.mxu0 %v857_v12  ;;  %1336 = vmatpush1.msra.mxu1 %v858_v9  ;;  %v884_v9 = vld [vmem:[#allocation7 + $0x130] sm:$0xff] }
  0xc2   : > { %943 = vmatpush1.msra.mxu0 %v856_v15  ;;  %1305 = vmatprep.subr.mxu1 %v857_v12  ;;  %v881_v12 = vld [vmem:[#allocation7 + $0x118] sm:$0xff] }
  0xc3   : > { %944 = vmatprep.subr.mxu0 %v855_v18  ;;  %1337 = vmatpush1.msra.mxu1 %v856_v15  ;;  %v878_v15 = vld [vmem:[#allocation7 + $0x100] sm:$0xff] }
  0xc4   : > { %945 = vmatpush1.msra.mxu0 %v854_v21  ;;  %1306 = vmatprep.subr.mxu1 %v855_v18  ;;  %v610_v18 = vsub.s32 0, %v1865_v17 }
  0xc5   : > { %946 = vmatprep.subr.mxu0 %v853_v23  ;;  %1338 = vmatpush1.msra.mxu1 %v854_v21 }
  0xc6   : > { %691 = vmatmul.mubr.bf16.gmra.mxu0 %v402_v22  ;;  %1307 = vmatprep.subr.mxu1 %v853_v23  ;;  %v1874_v21 = vrot.slane %v606_v19, %v610_v18  ;;  %v1878_v22 = vrot.slane %v606_v19, %v614_v20 }
  0xc7   : > { %792 = vmatmul.mubr.bf16.gmra.mxu1 %v404_v24  ;;  %700 = vmatprep.mubr.bf16.mxu0 %v407_v25 }
  0xc8   : > { %801 = vmatprep.mubr.bf16.mxu1 %v409_v26  ;;  %947 = vmatpush1.msra.mxu0 %v852_v27 }
  0xc9   : > { %948 = vmatprep.subr.mxu0 %v851_v29  ;;  %1339 = vmatpush1.msra.mxu1 %v852_v27 }
  0xca   : > { %949 = vmatpush1.msra.mxu0 %v850_v32  ;;  %1308 = vmatprep.subr.mxu1 %v851_v29 }
  0xcb   : > { %950 = vmatprep.subr.mxu0 %v849_v35  ;;  %1340 = vmatpush1.msra.mxu1 %v850_v32 }
  0xcc   : > { %951 = vmatpush1.msra.mxu0 %v848_v37  ;;  %1309 = vmatprep.subr.mxu1 %v849_v35 }
  0xcd   : > { %952 = vmatprep.subr.mxu0 %v847_v39  ;;  %1341 = vmatpush1.msra.mxu1 %v848_v37 }
  0xce   : > { %701 = vmatmul.mubr.bf16.gmra.mxu0 %v406_v38  ;;  %1310 = vmatprep.subr.mxu1 %v847_v39 }
  0xcf   : > { %802 = vmatmul.mubr.bf16.gmra.mxu1 %v408_v40  ;;  %710 = vmatprep.mubr.bf16.mxu0 %v411_v41 }
  0xd0   : > { %811 = vmatprep.mubr.bf16.mxu1 %v413_v42  ;;  %953 = vmatpush1.msra.mxu0 %v846_v43 }
  0xd1   : > { %954 = vmatprep.subr.mxu0 %v909_v44  ;;  %1342 = vmatpush1.msra.mxu1 %v846_v43 }
  0xd2   : > { %955 = vmatpush2.msra.mxu0 %v908_v46  ;;  %1311 = vmatprep.subr.mxu1 %v909_v44 }
  0xd3   : > { %956 = vmatprep.subr.mxu0 %v907_v48  ;;  %1343 = vmatpush2.msra.mxu1 %v908_v46 }
  0xd4   : > { %957 = vmatpush2.msra.mxu0 %v906_v49  ;;  %1312 = vmatprep.subr.mxu1 %v907_v48 }
  0xd5   : > { %958 = vmatprep.subr.mxu0 %v905_v51  ;;  %1344 = vmatpush2.msra.mxu1 %v906_v49 }
  0xd6   : > { %711 = vmatmul.mubr.bf16.gmra.mxu0 %v410_v50  ;;  %1313 = vmatprep.subr.mxu1 %v905_v51 }
  0xd7   : > { %812 = vmatmul.mubr.bf16.gmra.mxu1 %v412_v52  ;;  %959 = vmatpush2.msra.mxu0 %v904_v53 }
  0xd8   : > { %960 = vmatprep.subr.mxu0 %v903_v54  ;;  %1345 = vmatpush2.msra.mxu1 %v904_v53 }
  0xd9   : > { %961 = vmatpush2.msra.mxu0 %v902_v55  ;;  %1314 = vmatprep.subr.mxu1 %v903_v54 }
  0xda   : > { %962 = vmatprep.subr.mxu0 %v901_v56  ;;  %1346 = vmatpush2.msra.mxu1 %v902_v55 }
  0xdb   : > { %963 = vmatpush2.msra.mxu0 %v900_v57  ;;  %1315 = vmatprep.subr.mxu1 %v901_v56 }
  0xdc   : > { %964 = vmatprep.subr.mxu0 %v899_v58  ;;  %1347 = vmatpush2.msra.mxu1 %v900_v57 }
  0xdd   : > { %965 = vmatpush2.msra.mxu0 %v898_v59  ;;  %1316 = vmatprep.subr.mxu1 %v899_v58 }
  0xde   : > { %966 = vmatprep.subr.mxu0 %v897_v60  ;;  %1348 = vmatpush2.msra.mxu1 %v898_v59 }
  0xdf   : > { %967 = vmatpush2.msra.mxu0 %v896_v61  ;;  %1317 = vmatprep.subr.mxu1 %v897_v60 }
  0xe0   : > { %968 = vmatprep.subr.mxu0 %v895_v62  ;;  %1349 = vmatpush2.msra.mxu1 %v896_v61 }
  0xe1   : > { %969 = vmatpush2.msra.mxu0 %v894_v63  ;;  %1318 = vmatprep.subr.mxu1 %v895_v62 }
  0xe2   : > { %970 = vmatprep.subr.mxu0 %v893_v0  ;;  %1350 = vmatpush2.msra.mxu1 %v894_v63 }
  0xe3   : > { %971 = vmatpush2.msra.mxu0 %v892_v1  ;;  %1319 = vmatprep.subr.mxu1 %v893_v0 }
  0xe4   : > { %972 = vmatprep.subr.mxu0 %v891_v2  ;;  %1351 = vmatpush2.msra.mxu1 %v892_v1 }
  0xe5   : > { %973 = vmatpush2.msra.mxu0 %v890_v3  ;;  %1320 = vmatprep.subr.mxu1 %v891_v2 }
  0xe6   : > { %974 = vmatprep.subr.mxu0 %v889_v4  ;;  %1352 = vmatpush2.msra.mxu1 %v890_v3 }
  0xe7   : > { %975 = vmatpush2.msra.mxu0 %v888_v5  ;;  %1321 = vmatprep.subr.mxu1 %v889_v4 }
  0xe8   : > { %976 = vmatprep.subr.mxu0 %v887_v6  ;;  %1353 = vmatpush2.msra.mxu1 %v888_v5 }
  0xe9   : > { %977 = vmatpush2.msra.mxu0 %v886_v7  ;;  %1322 = vmatprep.subr.mxu1 %v887_v6 }
  0xea   : > { %978 = vmatprep.subr.mxu0 %v885_v8  ;;  %1354 = vmatpush2.msra.mxu1 %v886_v7 }
  0xeb   : > { %979 = vmatpush2.msra.mxu0 %v884_v9  ;;  %1323 = vmatprep.subr.mxu1 %v885_v8 }
  0xec   : > { %980 = vmatprep.subr.mxu0 %v883_v10  ;;  %1355 = vmatpush2.msra.mxu1 %v884_v9 }
  0xed   : > { %981 = vmatpush2.msra.mxu0 %v882_v11  ;;  %1324 = vmatprep.subr.mxu1 %v883_v10 }
  0xee   : > { %982 = vmatprep.subr.mxu0 %v881_v12  ;;  %1356 = vmatpush2.msra.mxu1 %v882_v11 }
  0xef   : > { %983 = vmatpush2.msra.mxu0 %v880_v13  ;;  %1325 = vmatprep.subr.mxu1 %v881_v12 }
  0xf0   : > { %984 = vmatprep.subr.mxu0 %v879_v14  ;;  %1357 = vmatpush2.msra.mxu1 %v880_v13 }
  0xf1   : > { %985 = vmatpush2.msra.mxu0 %v878_v15  ;;  %1326 = vmatprep.subr.mxu1 %v879_v14 }
  0xf2   : > { %1358 = vmatpush2.msra.mxu1 %v878_v15 }
 0x166   : > { %v652_v23 = vpop.f32.mrf.mxu0 }
 0x167   : > { %v653_v24 = vadd.f32 %v652_v23, %v1874_v21  ;;  %v753_v25 = vpop.f32.mrf.mxu1 }
 0x168   : > { %v654_v26 = vpop.f32.mrf.mxu0 }
 0x169   : > { %v655_v27 = vadd.f32 %v654_v26, %v1878_v22  ;;  %v755_v28 = vpop.f32.mrf.mxu1  ;;  %v754_v29 = vadd.f32 %v753_v25, %v653_v24 }
 0x16a   : > { %v656_v30 = vpop.f32.mrf.mxu0 }
 0x16b   : > { %v756_v31 = vadd.f32 %v755_v28, %v655_v27  ;;  %v657_v32 = vadd.f32 %v656_v30, %v1874_v21  ;;  %v757_v33 = vpop.f32.mrf.mxu1  ;;  %v820_v38 = vmax.f32 %v754_v29, 0.0 }
 0x16c   : > { %v658_v34 = vpop.f32.mrf.mxu0 }
 0x16d   : > { %v821_v35 = vmax.f32 %v756_v31, 0.0  ;;  %v659_v36 = vadd.f32 %v658_v34, %v1878_v22  ;;  %v759_v37 = vpop.f32.mrf.mxu1  ;;  %v758_v39 = vadd.f32 %v757_v33, %v657_v32 }
 0x16e   : > { %v662_v40 = vpop.f32.mrf.mxu0 }
 0x16f   : > { %v760_v41 = vadd.f32 %v759_v37, %v659_v36  ;;  %v663_v42 = vadd.f32 %v662_v40, %v1874_v21  ;;  %v763_v43 = vpop.f32.mrf.mxu1  ;;  %986 = vmatprep.mubr.f32.mxu0 %v821_v35  ;;  %v822_v48 = vmax.f32 %v758_v39, 0.0 }
 0x170   : > { %v664_v44 = vpop.f32.mrf.mxu0  ;;  %987 = vmatmul.mubr.f32.vlgmr.msra.gmra.mxu0 %v820_v38 }
 0x171   : > { %v823_v45 = vmax.f32 %v760_v41, 0.0  ;;  %v665_v46 = vadd.f32 %v664_v44, %v1878_v22  ;;  %v765_v47 = vpop.f32.mrf.mxu1  ;;  %v764_v49 = vadd.f32 %v763_v43, %v663_v42 }
 0x172   : > { %v666_v50 = vpop.f32.mrf.mxu0 }
 0x173   : > { %v766_v51 = vadd.f32 %v765_v47, %v665_v46  ;;  %v667_v52 = vadd.f32 %v666_v50, %v1874_v21  ;;  %v767_v53 = vpop.f32.mrf.mxu1  ;;  %992 = vmatprep.mubr.f32.mxu0 %v823_v45  ;;  %v824_v58 = vmax.f32 %v764_v49, 0.0 }
 0x174   : > { %v668_v54 = vpop.f32.mrf.mxu0  ;;  %993 = vmatmul.mubr.f32.gmra.mxu0 %v822_v48 }
 0x175   : > { %v825_v55 = vmax.f32 %v766_v51, 0.0  ;;  %v669_v56 = vadd.f32 %v668_v54, %v1878_v22  ;;  %v769_v57 = vpop.f32.mrf.mxu1  ;;  %v768_v59 = vadd.f32 %v767_v53, %v667_v52 }
 0x176   : > { %v672_v60 = vpop.f32.mrf.mxu0 }
 0x177   : > { %v770_v61 = vadd.f32 %v769_v57, %v669_v56  ;;  %v673_v62 = vadd.f32 %v672_v60, %v1874_v21  ;;  %v773_v63 = vpop.f32.mrf.mxu1  ;;  %998 = vmatprep.mubr.f32.mxu0 %v825_v55  ;;  %v826_v4 = vmax.f32 %v768_v59, 0.0 }
 0x178   : > { %v674_v0 = vpop.f32.mrf.mxu0  ;;  %999 = vmatmul.mubr.f32.gmra.mxu0 %v824_v58 }
 0x179   : > { %v827_v1 = vmax.f32 %v770_v61, 0.0  ;;  %v675_v2 = vadd.f32 %v674_v0, %v1878_v22  ;;  %v775_v3 = vpop.f32.mrf.mxu1  ;;  %v774_v5 = vadd.f32 %v773_v63, %v673_v62 }
 0x17a   : > { %v676_v6 = vpop.f32.mrf.mxu0 }
 0x17b   : > { %v776_v7 = vadd.f32 %v775_v3, %v675_v2  ;;  %v677_v8 = vadd.f32 %v676_v6, %v1874_v21  ;;  %v777_v9 = vpop.f32.mrf.mxu1  ;;  %1004 = vmatprep.mubr.f32.mxu0 %v827_v1  ;;  %v828_v14 = vmax.f32 %v774_v5, 0.0 }
 0x17c   : > { %v678_v10 = vpop.f32.mrf.mxu0  ;;  %1005 = vmatmul.mubr.f32.gmra.mxu0 %v826_v4 }
 0x17d   : > { %v829_v11 = vmax.f32 %v776_v7, 0.0  ;;  %v679_v12 = vadd.f32 %v678_v10, %v1878_v22  ;;  %v779_v13 = vpop.f32.mrf.mxu1  ;;  %v778_v15 = vadd.f32 %v777_v9, %v677_v8 }
 0x17e   : > { %v682_v16 = vpop.f32.mrf.mxu0 }
 0x17f   : > { %v780_v19 = vadd.f32 %v779_v13, %v679_v12  ;;  %v683_v23 = vadd.f32 %v682_v16, %v1874_v21  ;;  %v783_v24 = vpop.f32.mrf.mxu1  ;;  %1010 = vmatprep.mubr.f32.mxu0 %v829_v11  ;;  %v830_v29 = vmax.f32 %v778_v15, 0.0 }
 0x180   : > { %v684_v25 = vpop.f32.mrf.mxu0  ;;  %1011 = vmatmul.mubr.f32.gmra.mxu0 %v828_v14 }
 0x181   : > { %v831_v26 = vmax.f32 %v780_v19, 0.0  ;;  %v685_v27 = vadd.f32 %v684_v25, %v1878_v22  ;;  %v785_v28 = vpop.f32.mrf.mxu1  ;;  %v784_v30 = vadd.f32 %v783_v24, %v683_v23 }
 0x182   : > { %v686_v31 = vpop.f32.mrf.mxu0 }
 0x183   : > { %v786_v32 = vadd.f32 %v785_v28, %v685_v27  ;;  %v687_v33 = vadd.f32 %v686_v31, %v1874_v21  ;;  %v787_v34 = vpop.f32.mrf.mxu1  ;;  %1016 = vmatprep.mubr.f32.mxu0 %v831_v26  ;;  %v832_v39 = vmax.f32 %v784_v30, 0.0 }
 0x184   : > { %v688_v35 = vpop.f32.mrf.mxu0  ;;  %1017 = vmatmul.mubr.f32.gmra.mxu0 %v830_v29 }
 0x185   : > { %v833_v36 = vmax.f32 %v786_v32, 0.0  ;;  %v689_v37 = vadd.f32 %v688_v35, %v1878_v22  ;;  %v789_v38 = vpop.f32.mrf.mxu1  ;;  %v788_v40 = vadd.f32 %v787_v34, %v687_v33 }
 0x186   : > { %v692_v41 = vpop.f32.mrf.mxu0 }
 0x187   : > { %v790_v42 = vadd.f32 %v789_v38, %v689_v37  ;;  %v693_v43 = vadd.f32 %v692_v41, %v1874_v21  ;;  %v793_v44 = vpop.f32.mrf.mxu1  ;;  %1022 = vmatprep.mubr.f32.mxu0 %v833_v36  ;;  %v834_v49 = vmax.f32 %v788_v40, 0.0  ;;  %v910_v38 = vld [vmem:[%s2084_s4] sm:$0x3] }
 0x188   : > { %v694_v45 = vpop.f32.mrf.mxu0  ;;  %1023 = vmatmul.mubr.f32.gmra.mxu0 %v832_v39  ;;  %v1916_v39 = vrot.slane %v910_v38, %v614_v20 }
 0x189   : > { %v835_v46 = vmax.f32 %v790_v42, 0.0  ;;  %v695_v47 = vadd.f32 %v694_v45, %v1878_v22  ;;  %v795_v48 = vpop.f32.mrf.mxu1  ;;  %v794_v50 = vadd.f32 %v793_v44, %v693_v43 }
 0x18a   : > { %v696_v51 = vpop.f32.mrf.mxu0 }
 0x18b   : > { %v796_v52 = vadd.f32 %v795_v48, %v695_v47  ;;  %v697_v53 = vadd.f32 %v696_v51, %v1874_v21  ;;  %v797_v54 = vpop.f32.mrf.mxu1  ;;  %1028 = vmatprep.mubr.f32.mxu1 %v835_v46  ;;  %v836_v59 = vmax.f32 %v794_v50, 0.0 }
 0x18c   : > { %v698_v55 = vpop.f32.mrf.mxu0  ;;  %1029 = vmatmul.mubr.f32.vlgmr.msra.gmra.mxu1 %v834_v49 }
 0x18d   : > { %v837_v56 = vmax.f32 %v796_v52, 0.0  ;;  %v699_v57 = vadd.f32 %v698_v55, %v1878_v22  ;;  %v799_v58 = vpop.f32.mrf.mxu1  ;;  %v798_v60 = vadd.f32 %v797_v54, %v697_v53 }
 0x18e   : > { %v702_v61 = vpop.f32.mrf.mxu0 }
 0x18f   : > { %v800_v62 = vadd.f32 %v799_v58, %v699_v57  ;;  %v703_v63 = vadd.f32 %v702_v61, %v1874_v21  ;;  %v803_v0 = vpop.f32.mrf.mxu1  ;;  %1034 = vmatprep.mubr.f32.mxu1 %v837_v56  ;;  %v838_v5 = vmax.f32 %v798_v60, 0.0 }
 0x190   : > { %v704_v1 = vpop.f32.mrf.mxu0  ;;  %1035 = vmatmul.mubr.f32.gmra.mxu1 %v836_v59 }
 0x191   : > { %v839_v2 = vmax.f32 %v800_v62, 0.0  ;;  %v705_v3 = vadd.f32 %v704_v1, %v1878_v22  ;;  %v805_v4 = vpop.f32.mrf.mxu1  ;;  %v804_v6 = vadd.f32 %v803_v0, %v703_v63 }
 0x192   : > { %v706_v7 = vpop.f32.mrf.mxu0 }
 0x193   : > { %v806_v8 = vadd.f32 %v805_v4, %v705_v3  ;;  %v707_v9 = vadd.f32 %v706_v7, %v1874_v21  ;;  %v807_v10 = vpop.f32.mrf.mxu1  ;;  %1040 = vmatprep.mubr.f32.mxu1 %v839_v2  ;;  %v840_v15 = vmax.f32 %v804_v6, 0.0 }
 0x194   : > { %v708_v11 = vpop.f32.mrf.mxu0  ;;  %1041 = vmatmul.mubr.f32.gmra.mxu1 %v838_v5 }
 0x195   : > { %v841_v12 = vmax.f32 %v806_v8, 0.0  ;;  %v709_v13 = vadd.f32 %v708_v11, %v1878_v22  ;;  %v809_v14 = vpop.f32.mrf.mxu1  ;;  %v808_v16 = vadd.f32 %v807_v10, %v707_v9 }
 0x196   : > { %v712_v19 = vpop.f32.mrf.mxu0 }
 0x197   : > { %v810_v23 = vadd.f32 %v809_v14, %v709_v13  ;;  %v713_v24 = vadd.f32 %v712_v19, %v1874_v21  ;;  %v813_v25 = vpop.f32.mrf.mxu1  ;;  %1046 = vmatprep.mubr.f32.mxu1 %v841_v12  ;;  %v842_v30 = vmax.f32 %v808_v16, 0.0 }
 0x198   : > { %v714_v26 = vpop.f32.mrf.mxu0  ;;  %1047 = vmatmul.mubr.f32.gmra.mxu1 %v840_v15 }
 0x199   : > { %v843_v27 = vmax.f32 %v810_v23, 0.0  ;;  %v715_v28 = vadd.f32 %v714_v26, %v1878_v22  ;;  %v815_v29 = vpop.f32.mrf.mxu1  ;;  %v814_v31 = vadd.f32 %v813_v25, %v713_v24  ;;  %v1912_v22 = vrot.slane %v910_v38, %v610_v18 }
 0x19a   : > { %v716_v32 = vpop.f32.mrf.mxu0 }
 0x19b   : > { %v816_v33 = vadd.f32 %v815_v29, %v715_v28  ;;  %v817_v34 = vpop.f32.mrf.mxu1  ;;  %1052 = vmatprep.mubr.f32.mxu1 %v843_v27  ;;  %v844_v21 = vmax.f32 %v814_v31, 0.0 }
 0x19c   : > { %v717_v35 = vpop.f32.mrf.mxu0  ;;  %1053 = vmatmul.mubr.f32.gmra.mxu1 %v842_v30 }
 0x19d   : > { %v845_v36 = vmax.f32 %v816_v33, 0.0  ;;  %v818_v37 = vpop.f32.mrf.mxu1 }
 0x19f   : > { %1058 = vmatprep.mubr.f32.mxu1 %v845_v36 }
 0x1a0   : > { %1059 = vmatmul.mubr.f32.gmra.mxu1 %v844_v21 }
 0x230   : > { %v988_v40 = vpop.f32.mrf.mxu0 }
 0x231   : > { %v989_v41 = vadd.f32 %v988_v40, %v1912_v22 }
 0x232   : > { %v990_v42 = vpop.f32.mrf.mxu0 }
 0x233   : > { %1065 = vst [vmem:[%s1919_s12] sm:$0xff] %v989_v41  ;;  %v991_v43 = vadd.f32 %v990_v42, %v1916_v39 }
 0x234   : > { %v994_v44 = vpop.f32.mrf.mxu0 }
 0x235   : > { %1078 = vst [vmem:[%s1923_s28] sm:$0xff] %v991_v43  ;;  %v995_v17 = vadd.f32 %v994_v44, %v1912_v22 }
 0x236   : > { %v996_v18 = vpop.f32.mrf.mxu0 }
 0x237   : > { %1066 = vst [vmem:[%s1919_s12 + $0x8] sm:$0xff] %v995_v17  ;;  %v997_v20 = vadd.f32 %v996_v18, %v1916_v39 }
 0x238   : > { %v1000_v45 = vpop.f32.mrf.mxu0 }
 0x239   : > { %1079 = vst [vmem:[%s1923_s28 + $0x8] sm:$0xff] %v997_v20  ;;  %v1001_v46 = vadd.f32 %v1000_v45, %v1912_v22 }
 0x23a   : > { %v1002_v47 = vpop.f32.mrf.mxu0 }
 0x23b   : > { %1067 = vst [vmem:[%s1919_s12 + $0x10] sm:$0xff] %v1001_v46  ;;  %v1003_v48 = vadd.f32 %v1002_v47, %v1916_v39 }
 0x23c   : > { %v1006_v49 = vpop.f32.mrf.mxu0 }
 0x23d   : > { %1080 = vst [vmem:[%s1923_s28 + $0x10] sm:$0xff] %v1003_v48  ;;  %v1007_v50 = vadd.f32 %v1006_v49, %v1912_v22 }
 0x23e   : > { %v1008_v51 = vpop.f32.mrf.mxu0 }
 0x23f   : > { %1068 = vst [vmem:[%s1919_s12 + $0x18] sm:$0xff] %v1007_v50  ;;  %v1009_v52 = vadd.f32 %v1008_v51, %v1916_v39 }
 0x240   : > { %v1012_v53 = vpop.f32.mrf.mxu0 }
 0x241   : > { %1081 = vst [vmem:[%s1923_s28 + $0x18] sm:$0xff] %v1009_v52  ;;  %v1013_v54 = vadd.f32 %v1012_v53, %v1912_v22 }
 0x242   : > { %v1014_v55 = vpop.f32.mrf.mxu0 }
 0x243   : > { %1069 = vst [vmem:[%s1919_s12 + $0x20] sm:$0xff] %v1013_v54  ;;  %v1015_v56 = vadd.f32 %v1014_v55, %v1916_v39 }
 0x244   : > { %v1018_v57 = vpop.f32.mrf.mxu0 }
 0x245   : > { %1082 = vst [vmem:[%s1923_s28 + $0x20] sm:$0xff] %v1015_v56  ;;  %v1019_v58 = vadd.f32 %v1018_v57, %v1912_v22 }
 0x246   : > { %v1020_v59 = vpop.f32.mrf.mxu0 }
 0x247   : > { %1070 = vst [vmem:[%s1919_s12 + $0x28] sm:$0xff] %v1019_v58  ;;  %v1021_v60 = vadd.f32 %v1020_v59, %v1916_v39 }
 0x248   : > { %v1024_v61 = vpop.f32.mrf.mxu0 }
 0x249   : > { %1083 = vst [vmem:[%s1923_s28 + $0x28] sm:$0xff] %v1021_v60  ;;  %v1025_v62 = vadd.f32 %v1024_v61, %v1912_v22 }
 0x24a   : > { %v1026_v63 = vpop.f32.mrf.mxu0 }
 0x24b   : > { %1071 = vst [vmem:[%s1919_s12 + $0x30] sm:$0xff] %v1025_v62  ;;  %v1027_v0 = vadd.f32 %v1026_v63, %v1916_v39 }
 0x24c   : > { %v1030_v1 = vpop.f32.mrf.mxu1 }
 0x24d   : > { %1084 = vst [vmem:[%s1923_s28 + $0x30] sm:$0xff] %v1027_v0  ;;  %v1031_v2 = vadd.f32 %v1030_v1, %v1912_v22 }
 0x24e   : > { %v1032_v3 = vpop.f32.mrf.mxu1 }
 0x24f   : > { %1072 = vst [vmem:[%s1919_s12 + $0x38] sm:$0xff] %v1031_v2  ;;  %v1033_v4 = vadd.f32 %v1032_v3, %v1916_v39 }
 0x250   : > { %v1036_v5 = vpop.f32.mrf.mxu1 }
 0x251   : > { %1085 = vst [vmem:[%s1923_s28 + $0x38] sm:$0xff] %v1033_v4  ;;  %v1037_v6 = vadd.f32 %v1036_v5, %v1912_v22 }
 0x252   : > { %v1038_v7 = vpop.f32.mrf.mxu1 }
 0x253   : > { %1073 = vst [vmem:[%s1919_s12 + $0x40] sm:$0xff] %v1037_v6  ;;  %v1039_v8 = vadd.f32 %v1038_v7, %v1916_v39 }
 0x254   : > { %v1042_v9 = vpop.f32.mrf.mxu1 }
 0x255   : > { %1086 = vst [vmem:[%s1923_s28 + $0x40] sm:$0xff] %v1039_v8  ;;  %v1043_v10 = vadd.f32 %v1042_v9, %v1912_v22 }
 0x256   : > { %v1044_v11 = vpop.f32.mrf.mxu1 }
 0x257   : > { %1074 = vst [vmem:[%s1919_s12 + $0x48] sm:$0xff] %v1043_v10  ;;  %v1045_v12 = vadd.f32 %v1044_v11, %v1916_v39 }
 0x258   : > { %v1048_v13 = vpop.f32.mrf.mxu1 }
 0x259   : > { %1087 = vst [vmem:[%s1923_s28 + $0x48] sm:$0xff] %v1045_v12  ;;  %v1049_v14 = vadd.f32 %v1048_v13, %v1912_v22 }
 0x25a   : > { %v1050_v15 = vpop.f32.mrf.mxu1 }
 0x25b   : > { %1075 = vst [vmem:[%s1919_s12 + $0x50] sm:$0xff] %v1049_v14  ;;  %v1051_v16 = vadd.f32 %v1050_v15, %v1916_v39 }
 0x25c   : > { %v1054_v19 = vpop.f32.mrf.mxu1 }
 0x25d   : > { %1088 = vst [vmem:[%s1923_s28 + $0x50] sm:$0xff] %v1051_v16  ;;  %v1055_v23 = vadd.f32 %v1054_v19, %v1912_v22 }
 0x25e   : > { %v1056_v24 = vpop.f32.mrf.mxu1 }
 0x25f   : > { %1076 = vst [vmem:[%s1919_s12 + $0x58] sm:$0xff] %v1055_v23  ;;  %v1057_v25 = vadd.f32 %v1056_v24, %v1916_v39 }
 0x260   : > { %v1060_v26 = vpop.f32.mrf.mxu1 }
 0x261   : > { %1089 = vst [vmem:[%s1923_s28 + $0x58] sm:$0xff] %v1057_v25  ;;  %v1061_v27 = vadd.f32 %v1060_v26, %v1912_v22  ;;  %1103 = sbr.rel (!%p2098_p10) target bundleno = 641 (0x281), region = 56 }
 0x262   : > { %v1062_v28 = vpop.f32.mrf.mxu1 }
 0x263   : > { %1077 = vst [vmem:[%s1919_s12 + $0x60] sm:$0xff] %v1061_v27  ;;  %v1063_v29 = vadd.f32 %v1062_v28, %v1916_v39 }
 0x265   : > { %1090 = vst [vmem:[%s1923_s28 + $0x60] sm:$0xff] %v1063_v29 }
 0x266   : > { %s2108_s17 = smov (!%p1106_p1, %s1105_s17), 13 }
 0x267   : > { %s1979_s16 = sshll.u32 %s2108_s17, 7 }
 0x268   : > { %s1110_s19 = ssub.s32 1664, %s1979_s16 }
 0x269   : > { %1111 = vsyncadd %s1092_s29, %s1110_s19  ;;  %p1278_p3 = scmp.ne.s32.totalorder %s1979_s16, 0  ;;  %s1292_s7 = smul.u32 1664, %s1681_s25 }
 0x26a   : > { %s1116_s8 = sshll.u32 %s1919_s12, 4  ;;  %s1619_s13 = smov [#allocation8]   ;;  %s1992_s8 = int_to_ptr.vmem [resolvable:$true] %s1116_s8 }
 0x26b   : > { %s1990_s18 = scalar_lea.hbm %s2085_s5, %s1292_s7  ;;  %s1512_s26 = scalar_lea.vmem %s1992_s8, %s1979_s16 }
 0x26c   : > { %p1513_p7 = scmp.ne.s32.totalorder %s1992_s8, %s1512_s26  ;;  %s1516_s17 = sshll.u32 %s1619_s13, 4  ;;  %s1517_s17 = int_to_ptr.vmem [resolvable:$false] %s1516_s17 }
 0x26d   : > { %s1518_s19 = scalar_lea.vmem %s1517_s17, 3328  ;;  %p1519_p4 = scmp.lt.s32.totalorder %s1992_s8, %s1517_s17 }
 0x26e   : > { %p1514_p9 = pnand %p1513_p7, %p1278_p3  ;;  %p1520_p6 = scmp.lt.s32.totalorder %s1518_s19, %s1512_s26 }
 0x270   : > { %p1515_p12 = pneg %p1514_p9  ;;  %p1521_p11 = por %p1520_p6, %p1519_p4 }
 0x272   : > { %p1522_p0 = pnand %p1521_p11, %p1515_p12 }
 0x274   : > { %1525 = shalt.err (!%p1522_p0)
}
 0x275   : > { %s1526_s12 = scalar_lea.hbm %s1990_s18, %s1979_s16  ;;  %s1530_s14 = scalar_lea.hbm %s2085_s5, 3200 }
 0x276   : > { %p1527_p2 = scmp.ne.s32.totalorder %s1990_s18, %s1526_s12  ;;  %p1531_p10 = scmp.lt.s32.totalorder %s1990_s18, %s2085_s5 }
 0x277   : > { %p1532_p1 = scmp.lt.s32.totalorder %s1530_s14, %s1526_s12 }
 0x278   : > { %p1528_p5 = pnand %p1527_p2, %p1278_p3 }
 0x279   : > { %p1533_p7 = por %p1532_p1, %p1531_p10 }
 0x27a   : > { %p1529_p13 = pneg %p1528_p5 }
 0x27c   : > { %p1534_p9 = pnand %p1533_p7, %p1529_p13 }
 0x27e   : > { %1537 = shalt.err (!%p1534_p9)
}
 0x27f   : > { %s1620_s26 = smov 128   ;;  %s1621_s19 = smov 8  }
 0x280   : > { %1122 = dma.vmem_to_hbm [thread:$0]  (%p1278_p3), %s1992_s8, %s1979_s16, %s1990_s18, %s1092_s29, %s1620_s26, %s1620_s26, %s1621_s19  }
 0x281 PF: > { %p2099_p12 = scmp.ne.s32.totalorder %s2091_s9, 0 }
 0x282   : > { %s1126_s12 = smul.u32 (%p2099_p12), 13, %s1681_s25 }
 0x283   : > { %1125 = sbr.rel (!%p2099_p12) target bundleno = 675 (0x2a3), region = 60 }
 0x284   : > { %s1127_s7 = ssub.s32 (%p2099_p12), 25, %s1126_s12 }
 0x285   : > { %p1128_p4 = scmp.lt.s32.totalorder (%p2099_p12), %s1127_s7, 13 }
 0x288   : > { %s2110_s7 = smov (!%p1128_p4, %s1127_s7), 13 }
 0x289   : > { %s2022_s11 = sshll.u32 %s2110_s7, 7 }
 0x28a   : > { %s1132_s14 = ssub.s32 1664, %s2022_s11 }
 0x28b   : > { %1133 = vsyncadd %s1097_s15, %s1132_s14  ;;  %p1283_p3 = scmp.ne.s32.totalorder %s2022_s11, 0  ;;  %s1293_s9 = smul.u32 1664, %s1681_s25 }
 0x28c   : > { %s1138_s29 = sshll.u32 %s1923_s28, 4  ;;  %s1622_s17 = smov [#allocation9]   ;;  %s2035_s29 = int_to_ptr.vmem [resolvable:$true] %s1138_s29 }
 0x28d   : > { %s2033_s18 = scalar_lea.hbm %s2086_s6, %s1293_s9  ;;  %s1538_s13 = scalar_lea.vmem %s2035_s29, %s2022_s11 }
 0x28e   : > { %p1539_p6 = scmp.ne.s32.totalorder %s2035_s29, %s1538_s13  ;;  %s1542_s26 = sshll.u32 %s1622_s17, 4  ;;  %s1543_s26 = int_to_ptr.vmem [resolvable:$false] %s1542_s26 }
 0x28f   : > { %s1544_s25 = scalar_lea.vmem %s1543_s26, 3328  ;;  %p1545_p2 = scmp.lt.s32.totalorder %s2035_s29, %s1543_s26 }
 0x290   : > { %p1540_p11 = pnand %p1539_p6, %p1283_p3  ;;  %p1546_p5 = scmp.lt.s32.totalorder %s1544_s25, %s1538_s13 }
 0x292   : > { %p1541_p0 = pneg %p1540_p11  ;;  %p1547_p13 = por %p1546_p5, %p1545_p2 }
 0x294   : > { %p1548_p10 = pnand %p1547_p13, %p1541_p0 }
 0x296   : > { %1551 = shalt.err (!%p1548_p10)
}
 0x297   : > { %s1552_s28 = scalar_lea.hbm %s2033_s18, %s2022_s11  ;;  %s1556_s7 = scalar_lea.hbm %s2086_s6, 3200 }
 0x298   : > { %p1553_p1 = scmp.ne.s32.totalorder %s2033_s18, %s1552_s28  ;;  %p1557_p12 = scmp.lt.s32.totalorder %s2033_s18, %s2086_s6 }
 0x299   : > { %p1558_p4 = scmp.lt.s32.totalorder %s1556_s7, %s1552_s28 }
 0x29a   : > { %p1554_p7 = pnand %p1553_p1, %p1283_p3 }
 0x29b   : > { %p1559_p6 = por %p1558_p4, %p1557_p12 }
 0x29c   : > { %p1555_p9 = pneg %p1554_p7 }
 0x29e   : > { %p1560_p11 = pnand %p1559_p6, %p1555_p9 }
 0x2a0   : > { %1563 = shalt.err (!%p1560_p11)
}
 0x2a1   : > { %s1623_s16 = smov 128   ;;  %s1624_s8 = smov 8  }
 0x2a2   : > { %1144 = dma.vmem_to_hbm [thread:$0]  (%p1283_p3), %s2035_s29, %s2022_s11, %s2033_s18, %s1097_s15, %s1623_s16, %s1623_s16, %s1624_s8  }
 0x2a3 PF: > { %s1153_s13 = sand.u32 1, %s1598_s21   ;;  %p2100_p0 = scmp.ne.s32.totalorder %s2092_s10, 0 }
 0x2a4   : > { %s1154_s17 = scalar_lea.sflag [#allocation4], %s1153_s13 }
 0x2a5   : > { %p1381_p2 = pnand %p1266_p8, %p2100_p0 }
 0x2a7   : > { %p1382_p5 = pneg %p1381_p2 }
 0x2a9   : > { %1589 = dma.done.wait (%p1382_p5), %s1154_s17, 1664  }
 0x2aa   : > { %1591 = vsyncadd (%p1382_p5), %s1154_s17, 4294965632  ;;  %s1163_s26 = scalar_lea.sflag [#allocation10], %s1153_s13 }
 0x2ab   : > { %1593 = dma.done.wait (%p1382_p5), %s1163_s26, 1664  }
 0x2ac   : > { %1595 = vsyncadd (%p1382_p5), %s1163_s26, 4294965632  ;;  %p24_p3 = scmp.ge.s32.totalorder %s1685_s27, 4   ;;  %s2101_s21 = smov %s1602_s22 }
 0x2ad   : > { %s2102_s22 = smov %s1606_s23  ;;  %s2103_s23 = smov %s1697_s30 }
 0x2ae   : > { %s2104_s24 = smov %s1685_s27  ;;  %26 = sbr.rel (!%p24_p3) target bundleno = 8 (0x8), region = 110 }
 0x2b3   :  { %1168 = vsyncpa [#allocation3], 1 }
 0x2b4   :  { %1170 = vsyncpa [#allocation3 + $0x1], 1 }
 0x2b5   :  { %1171 = vsyncpa [#allocation6], 1 }
 0x2b6   :  { %1172 = vsyncpa [#allocation4], 1 }
 0x2b7   :  { %1174 = vsyncpa [#allocation4 + $0x1], 1 }
 0x2b8   :  { %1175 = vsyncpa [#allocation10], 1 }
 0x2b9   :  { %1177 = vsyncpa [#allocation10 + $0x1], 1 }

</bundles_post_ra>
